<compile_context>
chip_gen: v7x
topology: tpu7x:2x2x1
jax: 0.10.0
libtpu: 0.0.40
codegen_flags: <defaults>
</compile_context>

<pallas_src>
import jax
import jax.numpy as jnp
from jax import lax
from jax.experimental import pallas as pl
from jax.experimental.pallas import tpu as pltpu


# --------------------------------------------------------------------------- #
# Kernel
# --------------------------------------------------------------------------- #
def _make_gru_kernel(S, V, H, D):
    """GRU kernel for D directions (1 or 2) fused in one pallas_call."""
    DH = D * H
    DG = D * 3 * H

    def kernel(ids_ref, pcat_ref, whh_ref, bhhn_ref, out_ref, hn_ref):
        # ids_ref : (S,)       int32 token ids (SMEM, scalar prefetch)
        # pcat_ref: (D*V, DG)  fused embedding->gate-preactivation table;
        #                      direction-d row block only feeds direction-d cols
        # whh_ref : (DH, DG)   block-diagonal recurrent weights, gate-interleaved
        # bhhn_ref: (1, DH)    hidden n-gate bias (must stay inside r * (.))
        # out_ref : (S, H)     per-step hidden states (fwd+bwd summed for D=2)
        # hn_ref  : (1, H)     final hidden state (summed for D=2)

        # ---- fused embedding gather + input projection (one MXU matmul) -----
        # One-hot selector (S, D*V): forward block selects token ids[t],
        # backward block selects ids[S-1-t] (time reversal folded here, once).
        iota_v = lax.broadcasted_iota(jnp.int32, (1, V), 1)
        rows = []
        for t in range(S):
            blk = [(iota_v == ids_ref[t]).astype(jnp.float32)]
            if D == 2:
                blk.append((iota_v == ids_ref[S - 1 - t]).astype(jnp.float32))
            rows.append(blk[0] if D == 1 else jnp.concatenate(blk, axis=1))
        sel = jnp.concatenate(rows, axis=0)                        # (S, D*V)

        # gx row t = [r_f r_b | z_f z_b | n_f n_b] input pre-activations with
        # input biases folded; forward half for time t, backward for S-1-t.
        gx = jnp.dot(sel, pcat_ref[...],
                     preferred_element_type=jnp.float32)           # (S, DG)

        whh = whh_ref[...]        # loop-invariant: VMEM -> vregs once
        bhh_n = bhhn_ref[...]     # (1, DH)

        # ---- serial recurrence, statically unrolled, h carried in vregs -----
        h = jnp.zeros((1, DH), jnp.float32)                        # [h_f | h_b]
        hs = []
        for t in range(S):
            gx_t = gx[t:t + 1, :]                                  # (1, DG)
            gh = jnp.dot(h, whh, preferred_element_type=jnp.float32)  # (1, DG)
            r = jax.nn.sigmoid(gx_t[:, 0:DH] + gh[:, 0:DH])
            z = jax.nn.sigmoid(gx_t[:, DH:2 * DH] + gh[:, DH:2 * DH])
            n = jnp.tanh(gx_t[:, 2 * DH:3 * DH]
                         + r * (gh[:, 2 * DH:3 * DH] + bhh_n))
            h = (1.0 - z) * n + z * h
            hs.append(h)

        # ---- epilogue: time-aligned fwd+bwd sum in vregs, one dense store ---
        if D == 2:
            out_rows = [hs[t][:, 0:H] + hs[S - 1 - t][:, H:2 * H]
                        for t in range(S)]
            out_ref[...] = jnp.concatenate(out_rows, axis=0)
            hn_ref[...] = h[:, 0:H] + h[:, H:2 * H]
        else:
            out_ref[...] = jnp.concatenate(hs, axis=0)
            hn_ref[...] = h

    return kernel


# --------------------------------------------------------------------------- #
# Host-side weight preparation (cacheable across calls with fixed weights)
# --------------------------------------------------------------------------- #
def prepare_gru_tables(emb, w_ih, w_hh, b_ih, b_hh):
    """PyTorch-layout params -> fused tables for the kernel.

    emb: (V, E); w_ih[d]: (3H, E); w_hh[d]: (3H, H); b_*[d]: (3H,)
    """
    V, _ = emb.shape
    D = len(w_ih)
    H = w_hh[0].shape[1]
    DG = D * 3 * H

    # Gate-interleaved column layout: [r_0..r_{D-1} | z_0.. | n_0..], H each.
    wih_int = jnp.concatenate(
        [w_ih[d].T[:, g * H:(g + 1) * H] for g in range(3) for d in range(D)],
        axis=1).astype(jnp.float32)                                # (E, DG)

    bgx_blocks = []
    for g in range(3):
        for d in range(D):
            b = b_ih[d][g * H:(g + 1) * H]
            if g < 2:                       # fold bias_hh into r, z gates only
                b = b + b_hh[d][g * H:(g + 1) * H]
            bgx_blocks.append(b)
    bgx = jnp.concatenate(bgx_blocks).reshape(1, DG).astype(jnp.float32)

    # Fused Embedding + input projection lookup table: row v = gates(emb[v]).
    p = emb.astype(jnp.float32) @ wih_int + bgx                    # (V, DG)

    # Stack one direction-masked copy per direction so a single one-hot matmul
    # gathers forward columns at time t and backward columns at time S-1-t.
    if D == 1:
        pcat = p
    else:
        col_dir = (jnp.arange(DG) // H) % D
        pcat = jnp.concatenate(
            [p * (col_dir == d).astype(jnp.float32)[None, :] for d in range(D)],
            axis=0)                                                # (D*V, DG)

    # Block-diagonal recurrent weights with gate-interleaved columns.
    whh_bd = jnp.zeros((D * H, DG), jnp.float32)
    for d in range(D):
        wt = w_hh[d].T.astype(jnp.float32)                         # (H, 3H)
        for g in range(3):
            c0 = (g * D + d) * H
            whh_bd = whh_bd.at[d * H:(d + 1) * H, c0:c0 + H].set(
                wt[:, g * H:(g + 1) * H])

    bhh_n = jnp.concatenate(
        [b_hh[d][2 * H:3 * H] for d in range(D)]).reshape(1, D * H)
    bhh_n = bhh_n.astype(jnp.float32)

    return dict(pcat=pcat, whh_bd=whh_bd, bhh_n=bhh_n, V=V, H=H, D=D)


def gru_pallas(tables, token_ids):
    """Run the (bi)GRU. token_ids: (S,) int32. Returns (out (S,H), hn (1,H))."""
    S = token_ids.shape[0]
    V, H, D = tables["V"], tables["H"], tables["D"]
    DG = D * 3 * H
    DH = D * H

    kernel = _make_gru_kernel(S, V, H, D)
    out, hn = pl.pallas_call(
        kernel,
        out_shape=(jax.ShapeDtypeStruct((S, H), jnp.float32),
                   jax.ShapeDtypeStruct((1, H), jnp.float32)),
        grid_spec=pltpu.PrefetchScalarGridSpec(
            num_scalar_prefetch=1,          # token ids -> SMEM
            grid=(1,),
            in_specs=[
                pl.BlockSpec((D * V, DG), lambda i, ids: (0, 0)),
                pl.BlockSpec((DH, DG), lambda i, ids: (0, 0)),
                pl.BlockSpec((1, DH), lambda i, ids: (0, 0)),
            ],
            out_specs=(
                pl.BlockSpec((S, H), lambda i, ids: (0, 0)),
                pl.BlockSpec((1, H), lambda i, ids: (0, 0)),
            ),
        ),
        compiler_params=pltpu.CompilerParams(
            dimension_semantics=("arbitrary",)),
    )(token_ids.astype(jnp.int32), tables["pcat"], tables["whh_bd"],
      tables["bhh_n"])
    return out, hn


def basic_gru_forward(params, inputs, bidirectional):
    """inputs: (S,) int32 token ids.

    bidirectional=True  -> (outputs (S, H), hn (H,))    [PyTorch bidir branch]
    bidirectional=False -> (outputs (S, 1, H), hn (1, H))
    """
    if bidirectional:
        tables = prepare_gru_tables(
            params["emb"],
            [params["w_ih_f"], params["w_ih_b"]],
            [params["w_hh_f"], params["w_hh_b"]],
            [params["b_ih_f"], params["b_ih_b"]],
            [params["b_hh_f"], params["b_hh_b"]])
        out, hn = gru_pallas(tables, inputs)
        return out, hn[0]
    else:
        tables = prepare_gru_tables(
            params["emb"], [params["w_ih_f"]], [params["w_hh_f"]],
            [params["b_ih_f"]], [params["b_hh_f"]])
        out, hn = gru_pallas(tables, inputs)
        return out[:, None, :], hn


# ----- pure-JAX reference (for correctness check) --------------------------- #
def gru_ref(embeds, w_ih, w_hh, b_ih, b_hh):
    H = w_hh.shape[1]

    def cell(h, x):
        gx = x @ w_ih.T + b_ih
        gh = h @ w_hh.T + b_hh
        r = jax.nn.sigmoid(gx[0:H] + gh[0:H])
        z = jax.nn.sigmoid(gx[H:2 * H] + gh[H:2 * H])
        n = jnp.tanh(gx[2 * H:] + r * gh[2 * H:])
        h_new = (1.0 - z) * n + z * h
        return h_new, h_new

    h0 = jnp.zeros((H,), jnp.float32)
    hT, outs = lax.scan(cell, h0, embeds)
    return outs, hT


if __name__ == "__main__":
    vocab_size, embed_dim, hidden_size, seq_len = 64, 32, 32, 8

    key = jax.random.PRNGKey(0)
    keys = jax.random.split(key, 10)
    bound = 1.0 / float(hidden_size) ** 0.5

    def unif(k, shape):
        return jax.random.uniform(k, shape, jnp.float32, -bound, bound)

    params = {
        "emb":    jax.random.normal(keys[0], (vocab_size, embed_dim), jnp.float32),
        "w_ih_f": unif(keys[1], (3 * hidden_size, embed_dim)),
        "w_hh_f": unif(keys[2], (3 * hidden_size, hidden_size)),
        "b_ih_f": unif(keys[3], (3 * hidden_size,)),
        "b_hh_f": unif(keys[4], (3 * hidden_size,)),
        "w_ih_b": unif(keys[5], (3 * hidden_size, embed_dim)),
        "w_hh_b": unif(keys[6], (3 * hidden_size, hidden_size)),
        "b_ih_b": unif(keys[7], (3 * hidden_size,)),
        "b_hh_b": unif(keys[8], (3 * hidden_size,)),
    }
    inputs = jax.random.randint(keys[9], (seq_len,), 0, vocab_size, jnp.int32)

    # --- bidirectional (matches the PyTorch bidirectional branch) -------------
    outputs, hn = basic_gru_forward(params, inputs, bidirectional=True)
    jax.block_until_ready((outputs, hn))

    embeds = jnp.take(params["emb"], inputs, axis=0)
    ro_f, rh_f = gru_ref(embeds, params["w_ih_f"], params["w_hh_f"],
                         params["b_ih_f"], params["b_hh_f"])
    ro_b, rh_b = gru_ref(embeds[::-1], params["w_ih_b"], params["w_hh_b"],
                         params["b_ih_b"], params["b_hh_b"])
    ref_out = ro_f + ro_b[::-1]
    ref_hn = rh_f + rh_b

    assert outputs.shape == (seq_len, hidden_size)
    assert hn.shape == (hidden_size,)
    assert bool(jnp.allclose(outputs, ref_out, atol=1e-3, rtol=1e-3))
    assert bool(jnp.allclose(hn, ref_hn, atol=1e-3, rtol=1e-3))

    # --- unidirectional path (same kernel factory, D=1) ------------------------
    out_u, hn_u = basic_gru_forward(params, inputs, bidirectional=False)
    jax.block_until_ready((out_u, hn_u))
    assert out_u.shape == (seq_len, 1, hidden_size)
    assert hn_u.shape == (1, hidden_size)
    assert bool(jnp.allclose(out_u[:, 0, :], ro_f, atol=1e-3, rtol=1e-3))
    assert bool(jnp.allclose(hn_u[0], rh_f, atol=1e-3, rtol=1e-3))

    print("KERNEL_OK")
</pallas_src>

<mosaic_0001>
module attributes {stable_mosaic.version = 11 : i64} {
  func.func @kernel(%arg0: i32, %arg1: memref<8xi32, #tpu.memory_space<smem>>, %arg2: memref<128x192xf32, #tpu.memory_space<vmem>>, %arg3: memref<64x192xf32, #tpu.memory_space<vmem>>, %arg4: memref<1x64xf32, #tpu.memory_space<vmem>>, %arg5: memref<8x32xf32, #tpu.memory_space<vmem>>, %arg6: memref<1x32xf32, #tpu.memory_space<vmem>>) attributes {dimension_semantics = [#tpu.dimension_semantics<arbitrary>], iteration_bounds = array<i64: 1>, scalar_prefetch = 1 : i64, scratch_operands = 0 : i64, tpu.core_type = #tpu.core_type<tc>, window_params = [{pipeline_mode = #tpu.pipeline_mode<synchronous>, transform_indices = @transform_0, window_bounds = array<i64: 128, 192>}, {pipeline_mode = #tpu.pipeline_mode<synchronous>, transform_indices = @transform_1, window_bounds = array<i64: 64, 192>}, {pipeline_mode = #tpu.pipeline_mode<synchronous>, transform_indices = @transform_2, window_bounds = array<i64: 1, 64>}, {pipeline_mode = #tpu.pipeline_mode<synchronous>, transform_indices = @transform_3, window_bounds = array<i64: 8, 32>}, {pipeline_mode = #tpu.pipeline_mode<synchronous>, transform_indices = @transform_4, window_bounds = array<i64: 1, 32>}]} {
    %0 = tpu.iota {dimensions = array<i32: 1>} : vector<1x64xi32>
    %c0 = arith.constant 0 : index
    %1 = memref.load %arg1[%c0] : memref<8xi32, #tpu.memory_space<smem>>
    %2 = vector.broadcast %1 : i32 to vector<1x64xi32>
    %3 = arith.cmpi eq, %0, %2 : vector<1x64xi32>
    %4 = arith.extui %3 : vector<1x64xi1> to vector<1x64xi32>
    %5 = arith.sitofp %4 : vector<1x64xi32> to vector<1x64xf32>
    %c7 = arith.constant 7 : index
    %6 = memref.load %arg1[%c7] : memref<8xi32, #tpu.memory_space<smem>>
    %7 = vector.broadcast %6 : i32 to vector<1x64xi32>
    %8 = arith.cmpi eq, %0, %7 : vector<1x64xi32>
    %9 = arith.extui %8 : vector<1x64xi1> to vector<1x64xi32>
    %10 = arith.sitofp %9 : vector<1x64xi32> to vector<1x64xf32>
    %11 = tpu.concatenate %5, %10 in 1 : vector<1x64xf32>, vector<1x64xf32> -> vector<1x128xf32>
    %c1 = arith.constant 1 : index
    %12 = memref.load %arg1[%c1] : memref<8xi32, #tpu.memory_space<smem>>
    %13 = vector.broadcast %12 : i32 to vector<1x64xi32>
    %14 = arith.cmpi eq, %0, %13 : vector<1x64xi32>
    %15 = arith.extui %14 : vector<1x64xi1> to vector<1x64xi32>
    %16 = arith.sitofp %15 : vector<1x64xi32> to vector<1x64xf32>
    %c6 = arith.constant 6 : index
    %17 = memref.load %arg1[%c6] : memref<8xi32, #tpu.memory_space<smem>>
    %18 = vector.broadcast %17 : i32 to vector<1x64xi32>
    %19 = arith.cmpi eq, %0, %18 : vector<1x64xi32>
    %20 = arith.extui %19 : vector<1x64xi1> to vector<1x64xi32>
    %21 = arith.sitofp %20 : vector<1x64xi32> to vector<1x64xf32>
    %22 = tpu.concatenate %16, %21 in 1 : vector<1x64xf32>, vector<1x64xf32> -> vector<1x128xf32>
    %c2 = arith.constant 2 : index
    %23 = memref.load %arg1[%c2] : memref<8xi32, #tpu.memory_space<smem>>
    %24 = vector.broadcast %23 : i32 to vector<1x64xi32>
    %25 = arith.cmpi eq, %0, %24 : vector<1x64xi32>
    %26 = arith.extui %25 : vector<1x64xi1> to vector<1x64xi32>
    %27 = arith.sitofp %26 : vector<1x64xi32> to vector<1x64xf32>
    %c5 = arith.constant 5 : index
    %28 = memref.load %arg1[%c5] : memref<8xi32, #tpu.memory_space<smem>>
    %29 = vector.broadcast %28 : i32 to vector<1x64xi32>
    %30 = arith.cmpi eq, %0, %29 : vector<1x64xi32>
    %31 = arith.extui %30 : vector<1x64xi1> to vector<1x64xi32>
    %32 = arith.sitofp %31 : vector<1x64xi32> to vector<1x64xf32>
    %33 = tpu.concatenate %27, %32 in 1 : vector<1x64xf32>, vector<1x64xf32> -> vector<1x128xf32>
    %c3 = arith.constant 3 : index
    %34 = memref.load %arg1[%c3] : memref<8xi32, #tpu.memory_space<smem>>
    %35 = vector.broadcast %34 : i32 to vector<1x64xi32>
    %36 = arith.cmpi eq, %0, %35 : vector<1x64xi32>
    %37 = arith.extui %36 : vector<1x64xi1> to vector<1x64xi32>
    %38 = arith.sitofp %37 : vector<1x64xi32> to vector<1x64xf32>
    %c4 = arith.constant 4 : index
    %39 = memref.load %arg1[%c4] : memref<8xi32, #tpu.memory_space<smem>>
    %40 = vector.broadcast %39 : i32 to vector<1x64xi32>
    %41 = arith.cmpi eq, %0, %40 : vector<1x64xi32>
    %42 = arith.extui %41 : vector<1x64xi1> to vector<1x64xi32>
    %43 = arith.sitofp %42 : vector<1x64xi32> to vector<1x64xf32>
    %44 = tpu.concatenate %38, %43 in 1 : vector<1x64xf32>, vector<1x64xf32> -> vector<1x128xf32>
    %c4_0 = arith.constant 4 : index
    %45 = memref.load %arg1[%c4_0] : memref<8xi32, #tpu.memory_space<smem>>
    %46 = vector.broadcast %45 : i32 to vector<1x64xi32>
    %47 = arith.cmpi eq, %0, %46 : vector<1x64xi32>
    %48 = arith.extui %47 : vector<1x64xi1> to vector<1x64xi32>
    %49 = arith.sitofp %48 : vector<1x64xi32> to vector<1x64xf32>
    %c3_1 = arith.constant 3 : index
    %50 = memref.load %arg1[%c3_1] : memref<8xi32, #tpu.memory_space<smem>>
    %51 = vector.broadcast %50 : i32 to vector<1x64xi32>
    %52 = arith.cmpi eq, %0, %51 : vector<1x64xi32>
    %53 = arith.extui %52 : vector<1x64xi1> to vector<1x64xi32>
    %54 = arith.sitofp %53 : vector<1x64xi32> to vector<1x64xf32>
    %55 = tpu.concatenate %49, %54 in 1 : vector<1x64xf32>, vector<1x64xf32> -> vector<1x128xf32>
    %c5_2 = arith.constant 5 : index
    %56 = memref.load %arg1[%c5_2] : memref<8xi32, #tpu.memory_space<smem>>
    %57 = vector.broadcast %56 : i32 to vector<1x64xi32>
    %58 = arith.cmpi eq, %0, %57 : vector<1x64xi32>
    %59 = arith.extui %58 : vector<1x64xi1> to vector<1x64xi32>
    %60 = arith.sitofp %59 : vector<1x64xi32> to vector<1x64xf32>
    %c2_3 = arith.constant 2 : index
    %61 = memref.load %arg1[%c2_3] : memref<8xi32, #tpu.memory_space<smem>>
    %62 = vector.broadcast %61 : i32 to vector<1x64xi32>
    %63 = arith.cmpi eq, %0, %62 : vector<1x64xi32>
    %64 = arith.extui %63 : vector<1x64xi1> to vector<1x64xi32>
    %65 = arith.sitofp %64 : vector<1x64xi32> to vector<1x64xf32>
    %66 = tpu.concatenate %60, %65 in 1 : vector<1x64xf32>, vector<1x64xf32> -> vector<1x128xf32>
    %c6_4 = arith.constant 6 : index
    %67 = memref.load %arg1[%c6_4] : memref<8xi32, #tpu.memory_space<smem>>
    %68 = vector.broadcast %67 : i32 to vector<1x64xi32>
    %69 = arith.cmpi eq, %0, %68 : vector<1x64xi32>
    %70 = arith.extui %69 : vector<1x64xi1> to vector<1x64xi32>
    %71 = arith.sitofp %70 : vector<1x64xi32> to vector<1x64xf32>
    %c1_5 = arith.constant 1 : index
    %72 = memref.load %arg1[%c1_5] : memref<8xi32, #tpu.memory_space<smem>>
    %73 = vector.broadcast %72 : i32 to vector<1x64xi32>
    %74 = arith.cmpi eq, %0, %73 : vector<1x64xi32>
    %75 = arith.extui %74 : vector<1x64xi1> to vector<1x64xi32>
    %76 = arith.sitofp %75 : vector<1x64xi32> to vector<1x64xf32>
    %77 = tpu.concatenate %71, %76 in 1 : vector<1x64xf32>, vector<1x64xf32> -> vector<1x128xf32>
    %c7_6 = arith.constant 7 : index
    %78 = memref.load %arg1[%c7_6] : memref<8xi32, #tpu.memory_space<smem>>
    %79 = vector.broadcast %78 : i32 to vector<1x64xi32>
    %80 = arith.cmpi eq, %0, %79 : vector<1x64xi32>
    %81 = arith.extui %80 : vector<1x64xi1> to vector<1x64xi32>
    %82 = arith.sitofp %81 : vector<1x64xi32> to vector<1x64xf32>
    %c0_7 = arith.constant 0 : index
    %83 = memref.load %arg1[%c0_7] : memref<8xi32, #tpu.memory_space<smem>>
    %84 = vector.broadcast %83 : i32 to vector<1x64xi32>
    %85 = arith.cmpi eq, %0, %84 : vector<1x64xi32>
    %86 = arith.extui %85 : vector<1x64xi1> to vector<1x64xi32>
    %87 = arith.sitofp %86 : vector<1x64xi32> to vector<1x64xf32>
    %88 = tpu.concatenate %82, %87 in 1 : vector<1x64xf32>, vector<1x64xf32> -> vector<1x128xf32>
    %89 = tpu.concatenate %11, %22, %33, %44, %55, %66, %77, %88 in 0 : vector<1x128xf32>, vector<1x128xf32>, vector<1x128xf32>, vector<1x128xf32>, vector<1x128xf32>, vector<1x128xf32>, vector<1x128xf32>, vector<1x128xf32> -> vector<8x128xf32>
    %c0_8 = arith.constant 0 : index
    %c0_9 = arith.constant 0 : index
    %90 = vector.load %arg2[%c0_8, %c0_9] : memref<128x192xf32, #tpu.memory_space<vmem>>, vector<128x192xf32>
    %cst = arith.constant dense<0.000000e+00> : vector<8x192xf32>
    %91 = tpu.matmul %89, %90, %cst {dimension_numbers = #tpu.dot_dimension_numbers<[1], [0], [0], [1], [0, 0, 1, 1], [], []>} : vector<8x128xf32>, vector<128x192xf32>, vector<8x192xf32> -> vector<8x192xf32>
    %c0_10 = arith.constant 0 : index
    %c0_11 = arith.constant 0 : index
    %92 = vector.load %arg3[%c0_10, %c0_11] : memref<64x192xf32, #tpu.memory_space<vmem>>, vector<64x192xf32>
    %c0_12 = arith.constant 0 : index
    %c0_13 = arith.constant 0 : index
    %93 = vector.load %arg4[%c0_12, %c0_13] : memref<1x64xf32, #tpu.memory_space<vmem>>, vector<1x64xf32>
    %cst_14 = arith.constant 0.000000e+00 : f32
    %94 = vector.broadcast %cst_14 : f32 to vector<1x64xf32>
    %95 = vector.extract_strided_slice %91 {offsets = [0, 0], sizes = [1, 192], strides = [1, 1]} : vector<8x192xf32> to vector<1x192xf32>
    %cst_15 = arith.constant dense<0.000000e+00> : vector<1x192xf32>
    %96 = tpu.matmul %94, %92, %cst_15 {dimension_numbers = #tpu.dot_dimension_numbers<[1], [0], [0], [1], [0, 0, 1, 1], [], []>} : vector<1x64xf32>, vector<64x192xf32>, vector<1x192xf32> -> vector<1x192xf32>
    %97 = vector.extract_strided_slice %95 {offsets = [0, 0], sizes = [1, 64], strides = [1, 1]} : vector<1x192xf32> to vector<1x64xf32>
    %98 = vector.extract_strided_slice %96 {offsets = [0, 0], sizes = [1, 64], strides = [1, 1]} : vector<1x192xf32> to vector<1x64xf32>
    %99 = arith.addf %97, %98 : vector<1x64xf32>
    %100 = arith.negf %99 : vector<1x64xf32>
    %101 = math.exp %100 : vector<1x64xf32>
    %cst_16 = arith.constant 1.000000e+00 : f32
    %102 = vector.broadcast %cst_16 : f32 to vector<1x64xf32>
    %103 = arith.addf %102, %101 : vector<1x64xf32>
    %104 = arith.divf %102, %103 : vector<1x64xf32>
    %105 = vector.extract_strided_slice %95 {offsets = [0, 64], sizes = [1, 64], strides = [1, 1]} : vector<1x192xf32> to vector<1x64xf32>
    %106 = vector.extract_strided_slice %96 {offsets = [0, 64], sizes = [1, 64], strides = [1, 1]} : vector<1x192xf32> to vector<1x64xf32>
    %107 = arith.addf %105, %106 : vector<1x64xf32>
    %108 = arith.negf %107 : vector<1x64xf32>
    %109 = math.exp %108 : vector<1x64xf32>
    %cst_17 = arith.constant 1.000000e+00 : f32
    %110 = vector.broadcast %cst_17 : f32 to vector<1x64xf32>
    %111 = arith.addf %110, %109 : vector<1x64xf32>
    %112 = arith.divf %110, %111 : vector<1x64xf32>
    %113 = vector.extract_strided_slice %95 {offsets = [0, 128], sizes = [1, 64], strides = [1, 1]} : vector<1x192xf32> to vector<1x64xf32>
    %114 = vector.extract_strided_slice %96 {offsets = [0, 128], sizes = [1, 64], strides = [1, 1]} : vector<1x192xf32> to vector<1x64xf32>
    %115 = arith.addf %114, %93 : vector<1x64xf32>
    %116 = arith.mulf %104, %115 : vector<1x64xf32>
    %117 = arith.addf %113, %116 : vector<1x64xf32>
    %118 = math.tanh %117 : vector<1x64xf32>
    %cst_18 = arith.constant 1.000000e+00 : f32
    %119 = vector.broadcast %cst_18 : f32 to vector<1x64xf32>
    %120 = arith.subf %119, %112 : vector<1x64xf32>
    %121 = arith.mulf %120, %118 : vector<1x64xf32>
    %122 = arith.mulf %112, %94 : vector<1x64xf32>
    %123 = arith.addf %121, %122 : vector<1x64xf32>
    %124 = vector.extract_strided_slice %91 {offsets = [1, 0], sizes = [1, 192], strides = [1, 1]} : vector<8x192xf32> to vector<1x192xf32>
    %cst_19 = arith.constant dense<0.000000e+00> : vector<1x192xf32>
    %125 = tpu.matmul %123, %92, %cst_19 {dimension_numbers = #tpu.dot_dimension_numbers<[1], [0], [0], [1], [0, 0, 1, 1], [], []>} : vector<1x64xf32>, vector<64x192xf32>, vector<1x192xf32> -> vector<1x192xf32>
    %126 = vector.extract_strided_slice %124 {offsets = [0, 0], sizes = [1, 64], strides = [1, 1]} : vector<1x192xf32> to vector<1x64xf32>
    %127 = vector.extract_strided_slice %125 {offsets = [0, 0], sizes = [1, 64], strides = [1, 1]} : vector<1x192xf32> to vector<1x64xf32>
    %128 = arith.addf %126, %127 : vector<1x64xf32>
    %129 = arith.negf %128 : vector<1x64xf32>
    %130 = math.exp %129 : vector<1x64xf32>
    %cst_20 = arith.constant 1.000000e+00 : f32
    %131 = vector.broadcast %cst_20 : f32 to vector<1x64xf32>
    %132 = arith.addf %131, %130 : vector<1x64xf32>
    %133 = arith.divf %131, %132 : vector<1x64xf32>
    %134 = vector.extract_strided_slice %124 {offsets = [0, 64], sizes = [1, 64], strides = [1, 1]} : vector<1x192xf32> to vector<1x64xf32>
    %135 = vector.extract_strided_slice %125 {offsets = [0, 64], sizes = [1, 64], strides = [1, 1]} : vector<1x192xf32> to vector<1x64xf32>
    %136 = arith.addf %134, %135 : vector<1x64xf32>
    %137 = arith.negf %136 : vector<1x64xf32>
    %138 = math.exp %137 : vector<1x64xf32>
    %cst_21 = arith.constant 1.000000e+00 : f32
    %139 = vector.broadcast %cst_21 : f32 to vector<1x64xf32>
    %140 = arith.addf %139, %138 : vector<1x64xf32>
    %141 = arith.divf %139, %140 : vector<1x64xf32>
    %142 = vector.extract_strided_slice %124 {offsets = [0, 128], sizes = [1, 64], strides = [1, 1]} : vector<1x192xf32> to vector<1x64xf32>
    %143 = vector.extract_strided_slice %125 {offsets = [0, 128], sizes = [1, 64], strides = [1, 1]} : vector<1x192xf32> to vector<1x64xf32>
    %144 = arith.addf %143, %93 : vector<1x64xf32>
    %145 = arith.mulf %133, %144 : vector<1x64xf32>
    %146 = arith.addf %142, %145 : vector<1x64xf32>
    %147 = math.tanh %146 : vector<1x64xf32>
    %cst_22 = arith.constant 1.000000e+00 : f32
    %148 = vector.broadcast %cst_22 : f32 to vector<1x64xf32>
    %149 = arith.subf %148, %141 : vector<1x64xf32>
    %150 = arith.mulf %149, %147 : vector<1x64xf32>
    %151 = arith.mulf %141, %123 : vector<1x64xf32>
    %152 = arith.addf %150, %151 : vector<1x64xf32>
    %153 = vector.extract_strided_slice %91 {offsets = [2, 0], sizes = [1, 192], strides = [1, 1]} : vector<8x192xf32> to vector<1x192xf32>
    %cst_23 = arith.constant dense<0.000000e+00> : vector<1x192xf32>
    %154 = tpu.matmul %152, %92, %cst_23 {dimension_numbers = #tpu.dot_dimension_numbers<[1], [0], [0], [1], [0, 0, 1, 1], [], []>} : vector<1x64xf32>, vector<64x192xf32>, vector<1x192xf32> -> vector<1x192xf32>
    %155 = vector.extract_strided_slice %153 {offsets = [0, 0], sizes = [1, 64], strides = [1, 1]} : vector<1x192xf32> to vector<1x64xf32>
    %156 = vector.extract_strided_slice %154 {offsets = [0, 0], sizes = [1, 64], strides = [1, 1]} : vector<1x192xf32> to vector<1x64xf32>
    %157 = arith.addf %155, %156 : vector<1x64xf32>
    %158 = arith.negf %157 : vector<1x64xf32>
    %159 = math.exp %158 : vector<1x64xf32>
    %cst_24 = arith.constant 1.000000e+00 : f32
    %160 = vector.broadcast %cst_24 : f32 to vector<1x64xf32>
    %161 = arith.addf %160, %159 : vector<1x64xf32>
    %162 = arith.divf %160, %161 : vector<1x64xf32>
    %163 = vector.extract_strided_slice %153 {offsets = [0, 64], sizes = [1, 64], strides = [1, 1]} : vector<1x192xf32> to vector<1x64xf32>
    %164 = vector.extract_strided_slice %154 {offsets = [0, 64], sizes = [1, 64], strides = [1, 1]} : vector<1x192xf32> to vector<1x64xf32>
    %165 = arith.addf %163, %164 : vector<1x64xf32>
    %166 = arith.negf %165 : vector<1x64xf32>
    %167 = math.exp %166 : vector<1x64xf32>
    %cst_25 = arith.constant 1.000000e+00 : f32
    %168 = vector.broadcast %cst_25 : f32 to vector<1x64xf32>
    %169 = arith.addf %168, %167 : vector<1x64xf32>
    %170 = arith.divf %168, %169 : vector<1x64xf32>
    %171 = vector.extract_strided_slice %153 {offsets = [0, 128], sizes = [1, 64], strides = [1, 1]} : vector<1x192xf32> to vector<1x64xf32>
    %172 = vector.extract_strided_slice %154 {offsets = [0, 128], sizes = [1, 64], strides = [1, 1]} : vector<1x192xf32> to vector<1x64xf32>
    %173 = arith.addf %172, %93 : vector<1x64xf32>
    %174 = arith.mulf %162, %173 : vector<1x64xf32>
    %175 = arith.addf %171, %174 : vector<1x64xf32>
    %176 = math.tanh %175 : vector<1x64xf32>
    %cst_26 = arith.constant 1.000000e+00 : f32
    %177 = vector.broadcast %cst_26 : f32 to vector<1x64xf32>
    %178 = arith.subf %177, %170 : vector<1x64xf32>
    %179 = arith.mulf %178, %176 : vector<1x64xf32>
    %180 = arith.mulf %170, %152 : vector<1x64xf32>
    %181 = arith.addf %179, %180 : vector<1x64xf32>
    %182 = vector.extract_strided_slice %91 {offsets = [3, 0], sizes = [1, 192], strides = [1, 1]} : vector<8x192xf32> to vector<1x192xf32>
    %cst_27 = arith.constant dense<0.000000e+00> : vector<1x192xf32>
    %183 = tpu.matmul %181, %92, %cst_27 {dimension_numbers = #tpu.dot_dimension_numbers<[1], [0], [0], [1], [0, 0, 1, 1], [], []>} : vector<1x64xf32>, vector<64x192xf32>, vector<1x192xf32> -> vector<1x192xf32>
    %184 = vector.extract_strided_slice %182 {offsets = [0, 0], sizes = [1, 64], strides = [1, 1]} : vector<1x192xf32> to vector<1x64xf32>
    %185 = vector.extract_strided_slice %183 {offsets = [0, 0], sizes = [1, 64], strides = [1, 1]} : vector<1x192xf32> to vector<1x64xf32>
    %186 = arith.addf %184, %185 : vector<1x64xf32>
    %187 = arith.negf %186 : vector<1x64xf32>
    %188 = math.exp %187 : vector<1x64xf32>
    %cst_28 = arith.constant 1.000000e+00 : f32
    %189 = vector.broadcast %cst_28 : f32 to vector<1x64xf32>
    %190 = arith.addf %189, %188 : vector<1x64xf32>
    %191 = arith.divf %189, %190 : vector<1x64xf32>
    %192 = vector.extract_strided_slice %182 {offsets = [0, 64], sizes = [1, 64], strides = [1, 1]} : vector<1x192xf32> to vector<1x64xf32>
    %193 = vector.extract_strided_slice %183 {offsets = [0, 64], sizes = [1, 64], strides = [1, 1]} : vector<1x192xf32> to vector<1x64xf32>
    %194 = arith.addf %192, %193 : vector<1x64xf32>
    %195 = arith.negf %194 : vector<1x64xf32>
    %196 = math.exp %195 : vector<1x64xf32>
    %cst_29 = arith.constant 1.000000e+00 : f32
    %197 = vector.broadcast %cst_29 : f32 to vector<1x64xf32>
    %198 = arith.addf %197, %196 : vector<1x64xf32>
    %199 = arith.divf %197, %198 : vector<1x64xf32>
    %200 = vector.extract_strided_slice %182 {offsets = [0, 128], sizes = [1, 64], strides = [1, 1]} : vector<1x192xf32> to vector<1x64xf32>
    %201 = vector.extract_strided_slice %183 {offsets = [0, 128], sizes = [1, 64], strides = [1, 1]} : vector<1x192xf32> to vector<1x64xf32>
    %202 = arith.addf %201, %93 : vector<1x64xf32>
    %203 = arith.mulf %191, %202 : vector<1x64xf32>
    %204 = arith.addf %200, %203 : vector<1x64xf32>
    %205 = math.tanh %204 : vector<1x64xf32>
    %cst_30 = arith.constant 1.000000e+00 : f32
    %206 = vector.broadcast %cst_30 : f32 to vector<1x64xf32>
    %207 = arith.subf %206, %199 : vector<1x64xf32>
    %208 = arith.mulf %207, %205 : vector<1x64xf32>
    %209 = arith.mulf %199, %181 : vector<1x64xf32>
    %210 = arith.addf %208, %209 : vector<1x64xf32>
    %211 = vector.extract_strided_slice %91 {offsets = [4, 0], sizes = [1, 192], strides = [1, 1]} : vector<8x192xf32> to vector<1x192xf32>
    %cst_31 = arith.constant dense<0.000000e+00> : vector<1x192xf32>
    %212 = tpu.matmul %210, %92, %cst_31 {dimension_numbers = #tpu.dot_dimension_numbers<[1], [0], [0], [1], [0, 0, 1, 1], [], []>} : vector<1x64xf32>, vector<64x192xf32>, vector<1x192xf32> -> vector<1x192xf32>
    %213 = vector.extract_strided_slice %211 {offsets = [0, 0], sizes = [1, 64], strides = [1, 1]} : vector<1x192xf32> to vector<1x64xf32>
    %214 = vector.extract_strided_slice %212 {offsets = [0, 0], sizes = [1, 64], strides = [1, 1]} : vector<1x192xf32> to vector<1x64xf32>
    %215 = arith.addf %213, %214 : vector<1x64xf32>
    %216 = arith.negf %215 : vector<1x64xf32>
    %217 = math.exp %216 : vector<1x64xf32>
    %cst_32 = arith.constant 1.000000e+00 : f32
    %218 = vector.broadcast %cst_32 : f32 to vector<1x64xf32>
    %219 = arith.addf %218, %217 : vector<1x64xf32>
    %220 = arith.divf %218, %219 : vector<1x64xf32>
    %221 = vector.extract_strided_slice %211 {offsets = [0, 64], sizes = [1, 64], strides = [1, 1]} : vector<1x192xf32> to vector<1x64xf32>
    %222 = vector.extract_strided_slice %212 {offsets = [0, 64], sizes = [1, 64], strides = [1, 1]} : vector<1x192xf32> to vector<1x64xf32>
    %223 = arith.addf %221, %222 : vector<1x64xf32>
    %224 = arith.negf %223 : vector<1x64xf32>
    %225 = math.exp %224 : vector<1x64xf32>
    %cst_33 = arith.constant 1.000000e+00 : f32
    %226 = vector.broadcast %cst_33 : f32 to vector<1x64xf32>
    %227 = arith.addf %226, %225 : vector<1x64xf32>
    %228 = arith.divf %226, %227 : vector<1x64xf32>
    %229 = vector.extract_strided_slice %211 {offsets = [0, 128], sizes = [1, 64], strides = [1, 1]} : vector<1x192xf32> to vector<1x64xf32>
    %230 = vector.extract_strided_slice %212 {offsets = [0, 128], sizes = [1, 64], strides = [1, 1]} : vector<1x192xf32> to vector<1x64xf32>
    %231 = arith.addf %230, %93 : vector<1x64xf32>
    %232 = arith.mulf %220, %231 : vector<1x64xf32>
    %233 = arith.addf %229, %232 : vector<1x64xf32>
    %234 = math.tanh %233 : vector<1x64xf32>
    %cst_34 = arith.constant 1.000000e+00 : f32
    %235 = vector.broadcast %cst_34 : f32 to vector<1x64xf32>
    %236 = arith.subf %235, %228 : vector<1x64xf32>
    %237 = arith.mulf %236, %234 : vector<1x64xf32>
    %238 = arith.mulf %228, %210 : vector<1x64xf32>
    %239 = arith.addf %237, %238 : vector<1x64xf32>
    %240 = vector.extract_strided_slice %91 {offsets = [5, 0], sizes = [1, 192], strides = [1, 1]} : vector<8x192xf32> to vector<1x192xf32>
    %cst_35 = arith.constant dense<0.000000e+00> : vector<1x192xf32>
    %241 = tpu.matmul %239, %92, %cst_35 {dimension_numbers = #tpu.dot_dimension_numbers<[1], [0], [0], [1], [0, 0, 1, 1], [], []>} : vector<1x64xf32>, vector<64x192xf32>, vector<1x192xf32> -> vector<1x192xf32>
    %242 = vector.extract_strided_slice %240 {offsets = [0, 0], sizes = [1, 64], strides = [1, 1]} : vector<1x192xf32> to vector<1x64xf32>
    %243 = vector.extract_strided_slice %241 {offsets = [0, 0], sizes = [1, 64], strides = [1, 1]} : vector<1x192xf32> to vector<1x64xf32>
    %244 = arith.addf %242, %243 : vector<1x64xf32>
    %245 = arith.negf %244 : vector<1x64xf32>
    %246 = math.exp %245 : vector<1x64xf32>
    %cst_36 = arith.constant 1.000000e+00 : f32
    %247 = vector.broadcast %cst_36 : f32 to vector<1x64xf32>
    %248 = arith.addf %247, %246 : vector<1x64xf32>
    %249 = arith.divf %247, %248 : vector<1x64xf32>
    %250 = vector.extract_strided_slice %240 {offsets = [0, 64], sizes = [1, 64], strides = [1, 1]} : vector<1x192xf32> to vector<1x64xf32>
    %251 = vector.extract_strided_slice %241 {offsets = [0, 64], sizes = [1, 64], strides = [1, 1]} : vector<1x192xf32> to vector<1x64xf32>
    %252 = arith.addf %250, %251 : vector<1x64xf32>
    %253 = arith.negf %252 : vector<1x64xf32>
    %254 = math.exp %253 : vector<1x64xf32>
    %cst_37 = arith.constant 1.000000e+00 : f32
    %255 = vector.broadcast %cst_37 : f32 to vector<1x64xf32>
    %256 = arith.addf %255, %254 : vector<1x64xf32>
    %257 = arith.divf %255, %256 : vector<1x64xf32>
    %258 = vector.extract_strided_slice %240 {offsets = [0, 128], sizes = [1, 64], strides = [1, 1]} : vector<1x192xf32> to vector<1x64xf32>
    %259 = vector.extract_strided_slice %241 {offsets = [0, 128], sizes = [1, 64], strides = [1, 1]} : vector<1x192xf32> to vector<1x64xf32>
    %260 = arith.addf %259, %93 : vector<1x64xf32>
    %261 = arith.mulf %249, %260 : vector<1x64xf32>
    %262 = arith.addf %258, %261 : vector<1x64xf32>
    %263 = math.tanh %262 : vector<1x64xf32>
    %cst_38 = arith.constant 1.000000e+00 : f32
    %264 = vector.broadcast %cst_38 : f32 to vector<1x64xf32>
    %265 = arith.subf %264, %257 : vector<1x64xf32>
    %266 = arith.mulf %265, %263 : vector<1x64xf32>
    %267 = arith.mulf %257, %239 : vector<1x64xf32>
    %268 = arith.addf %266, %267 : vector<1x64xf32>
    %269 = vector.extract_strided_slice %91 {offsets = [6, 0], sizes = [1, 192], strides = [1, 1]} : vector<8x192xf32> to vector<1x192xf32>
    %cst_39 = arith.constant dense<0.000000e+00> : vector<1x192xf32>
    %270 = tpu.matmul %268, %92, %cst_39 {dimension_numbers = #tpu.dot_dimension_numbers<[1], [0], [0], [1], [0, 0, 1, 1], [], []>} : vector<1x64xf32>, vector<64x192xf32>, vector<1x192xf32> -> vector<1x192xf32>
    %271 = vector.extract_strided_slice %269 {offsets = [0, 0], sizes = [1, 64], strides = [1, 1]} : vector<1x192xf32> to vector<1x64xf32>
    %272 = vector.extract_strided_slice %270 {offsets = [0, 0], sizes = [1, 64], strides = [1, 1]} : vector<1x192xf32> to vector<1x64xf32>
    %273 = arith.addf %271, %272 : vector<1x64xf32>
    %274 = arith.negf %273 : vector<1x64xf32>
    %275 = math.exp %274 : vector<1x64xf32>
    %cst_40 = arith.constant 1.000000e+00 : f32
    %276 = vector.broadcast %cst_40 : f32 to vector<1x64xf32>
    %277 = arith.addf %276, %275 : vector<1x64xf32>
    %278 = arith.divf %276, %277 : vector<1x64xf32>
    %279 = vector.extract_strided_slice %269 {offsets = [0, 64], sizes = [1, 64], strides = [1, 1]} : vector<1x192xf32> to vector<1x64xf32>
    %280 = vector.extract_strided_slice %270 {offsets = [0, 64], sizes = [1, 64], strides = [1, 1]} : vector<1x192xf32> to vector<1x64xf32>
    %281 = arith.addf %279, %280 : vector<1x64xf32>
    %282 = arith.negf %281 : vector<1x64xf32>
    %283 = math.exp %282 : vector<1x64xf32>
    %cst_41 = arith.constant 1.000000e+00 : f32
    %284 = vector.broadcast %cst_41 : f32 to vector<1x64xf32>
    %285 = arith.addf %284, %283 : vector<1x64xf32>
    %286 = arith.divf %284, %285 : vector<1x64xf32>
    %287 = vector.extract_strided_slice %269 {offsets = [0, 128], sizes = [1, 64], strides = [1, 1]} : vector<1x192xf32> to vector<1x64xf32>
    %288 = vector.extract_strided_slice %270 {offsets = [0, 128], sizes = [1, 64], strides = [1, 1]} : vector<1x192xf32> to vector<1x64xf32>
    %289 = arith.addf %288, %93 : vector<1x64xf32>
    %290 = arith.mulf %278, %289 : vector<1x64xf32>
    %291 = arith.addf %287, %290 : vector<1x64xf32>
    %292 = math.tanh %291 : vector<1x64xf32>
    %cst_42 = arith.constant 1.000000e+00 : f32
    %293 = vector.broadcast %cst_42 : f32 to vector<1x64xf32>
    %294 = arith.subf %293, %286 : vector<1x64xf32>
    %295 = arith.mulf %294, %292 : vector<1x64xf32>
    %296 = arith.mulf %286, %268 : vector<1x64xf32>
    %297 = arith.addf %295, %296 : vector<1x64xf32>
    %298 = vector.extract_strided_slice %91 {offsets = [7, 0], sizes = [1, 192], strides = [1, 1]} : vector<8x192xf32> to vector<1x192xf32>
    %cst_43 = arith.constant dense<0.000000e+00> : vector<1x192xf32>
    %299 = tpu.matmul %297, %92, %cst_43 {dimension_numbers = #tpu.dot_dimension_numbers<[1], [0], [0], [1], [0, 0, 1, 1], [], []>} : vector<1x64xf32>, vector<64x192xf32>, vector<1x192xf32> -> vector<1x192xf32>
    %300 = vector.extract_strided_slice %298 {offsets = [0, 0], sizes = [1, 64], strides = [1, 1]} : vector<1x192xf32> to vector<1x64xf32>
    %301 = vector.extract_strided_slice %299 {offsets = [0, 0], sizes = [1, 64], strides = [1, 1]} : vector<1x192xf32> to vector<1x64xf32>
    %302 = arith.addf %300, %301 : vector<1x64xf32>
    %303 = arith.negf %302 : vector<1x64xf32>
    %304 = math.exp %303 : vector<1x64xf32>
    %cst_44 = arith.constant 1.000000e+00 : f32
    %305 = vector.broadcast %cst_44 : f32 to vector<1x64xf32>
    %306 = arith.addf %305, %304 : vector<1x64xf32>
    %307 = arith.divf %305, %306 : vector<1x64xf32>
    %308 = vector.extract_strided_slice %298 {offsets = [0, 64], sizes = [1, 64], strides = [1, 1]} : vector<1x192xf32> to vector<1x64xf32>
    %309 = vector.extract_strided_slice %299 {offsets = [0, 64], sizes = [1, 64], strides = [1, 1]} : vector<1x192xf32> to vector<1x64xf32>
    %310 = arith.addf %308, %309 : vector<1x64xf32>
    %311 = arith.negf %310 : vector<1x64xf32>
    %312 = math.exp %311 : vector<1x64xf32>
    %cst_45 = arith.constant 1.000000e+00 : f32
    %313 = vector.broadcast %cst_45 : f32 to vector<1x64xf32>
    %314 = arith.addf %313, %312 : vector<1x64xf32>
    %315 = arith.divf %313, %314 : vector<1x64xf32>
    %316 = vector.extract_strided_slice %298 {offsets = [0, 128], sizes = [1, 64], strides = [1, 1]} : vector<1x192xf32> to vector<1x64xf32>
    %317 = vector.extract_strided_slice %299 {offsets = [0, 128], sizes = [1, 64], strides = [1, 1]} : vector<1x192xf32> to vector<1x64xf32>
    %318 = arith.addf %317, %93 : vector<1x64xf32>
    %319 = arith.mulf %307, %318 : vector<1x64xf32>
    %320 = arith.addf %316, %319 : vector<1x64xf32>
    %321 = math.tanh %320 : vector<1x64xf32>
    %cst_46 = arith.constant 1.000000e+00 : f32
    %322 = vector.broadcast %cst_46 : f32 to vector<1x64xf32>
    %323 = arith.subf %322, %315 : vector<1x64xf32>
    %324 = arith.mulf %323, %321 : vector<1x64xf32>
    %325 = arith.mulf %315, %297 : vector<1x64xf32>
    %326 = arith.addf %324, %325 : vector<1x64xf32>
    %327 = vector.extract_strided_slice %123 {offsets = [0, 0], sizes = [1, 32], strides = [1, 1]} : vector<1x64xf32> to vector<1x32xf32>
    %328 = vector.extract_strided_slice %326 {offsets = [0, 32], sizes = [1, 32], strides = [1, 1]} : vector<1x64xf32> to vector<1x32xf32>
    %329 = arith.addf %327, %328 : vector<1x32xf32>
    %330 = vector.extract_strided_slice %152 {offsets = [0, 0], sizes = [1, 32], strides = [1, 1]} : vector<1x64xf32> to vector<1x32xf32>
    %331 = vector.extract_strided_slice %297 {offsets = [0, 32], sizes = [1, 32], strides = [1, 1]} : vector<1x64xf32> to vector<1x32xf32>
    %332 = arith.addf %330, %331 : vector<1x32xf32>
    %333 = vector.extract_strided_slice %181 {offsets = [0, 0], sizes = [1, 32], strides = [1, 1]} : vector<1x64xf32> to vector<1x32xf32>
    %334 = vector.extract_strided_slice %268 {offsets = [0, 32], sizes = [1, 32], strides = [1, 1]} : vector<1x64xf32> to vector<1x32xf32>
    %335 = arith.addf %333, %334 : vector<1x32xf32>
    %336 = vector.extract_strided_slice %210 {offsets = [0, 0], sizes = [1, 32], strides = [1, 1]} : vector<1x64xf32> to vector<1x32xf32>
    %337 = vector.extract_strided_slice %239 {offsets = [0, 32], sizes = [1, 32], strides = [1, 1]} : vector<1x64xf32> to vector<1x32xf32>
    %338 = arith.addf %336, %337 : vector<1x32xf32>
    %339 = vector.extract_strided_slice %239 {offsets = [0, 0], sizes = [1, 32], strides = [1, 1]} : vector<1x64xf32> to vector<1x32xf32>
    %340 = vector.extract_strided_slice %210 {offsets = [0, 32], sizes = [1, 32], strides = [1, 1]} : vector<1x64xf32> to vector<1x32xf32>
    %341 = arith.addf %339, %340 : vector<1x32xf32>
    %342 = vector.extract_strided_slice %268 {offsets = [0, 0], sizes = [1, 32], strides = [1, 1]} : vector<1x64xf32> to vector<1x32xf32>
    %343 = vector.extract_strided_slice %181 {offsets = [0, 32], sizes = [1, 32], strides = [1, 1]} : vector<1x64xf32> to vector<1x32xf32>
    %344 = arith.addf %342, %343 : vector<1x32xf32>
    %345 = vector.extract_strided_slice %297 {offsets = [0, 0], sizes = [1, 32], strides = [1, 1]} : vector<1x64xf32> to vector<1x32xf32>
    %346 = vector.extract_strided_slice %152 {offsets = [0, 32], sizes = [1, 32], strides = [1, 1]} : vector<1x64xf32> to vector<1x32xf32>
    %347 = arith.addf %345, %346 : vector<1x32xf32>
    %348 = vector.extract_strided_slice %326 {offsets = [0, 0], sizes = [1, 32], strides = [1, 1]} : vector<1x64xf32> to vector<1x32xf32>
    %349 = vector.extract_strided_slice %123 {offsets = [0, 32], sizes = [1, 32], strides = [1, 1]} : vector<1x64xf32> to vector<1x32xf32>
    %350 = arith.addf %348, %349 : vector<1x32xf32>
    %351 = tpu.concatenate %329, %332, %335, %338, %341, %344, %347, %350 in 0 : vector<1x32xf32>, vector<1x32xf32>, vector<1x32xf32>, vector<1x32xf32>, vector<1x32xf32>, vector<1x32xf32>, vector<1x32xf32>, vector<1x32xf32> -> vector<8x32xf32>
    %c0_47 = arith.constant 0 : index
    %c0_48 = arith.constant 0 : index
    %352 = vector.load %arg5[%c0_47, %c0_48] : memref<8x32xf32, #tpu.memory_space<vmem>>, vector<8x32xf32>
    tpu.vector_store %arg5[%c0_47, %c0_48], %351 {strides = array<i32>} : memref<8x32xf32, #tpu.memory_space<vmem>>, vector<8x32xf32>,
    %353 = vector.extract_strided_slice %326 {offsets = [0, 0], sizes = [1, 32], strides = [1, 1]} : vector<1x64xf32> to vector<1x32xf32>
    %354 = vector.extract_strided_slice %326 {offsets = [0, 32], sizes = [1, 32], strides = [1, 1]} : vector<1x64xf32> to vector<1x32xf32>
    %355 = arith.addf %353, %354 : vector<1x32xf32>
    %c0_49 = arith.constant 0 : index
    %c0_50 = arith.constant 0 : index
    %356 = vector.load %arg6[%c0_49, %c0_50] : memref<1x32xf32, #tpu.memory_space<vmem>>, vector<1x32xf32>
    tpu.vector_store %arg6[%c0_49, %c0_50], %355 {strides = array<i32>} : memref<1x32xf32, #tpu.memory_space<vmem>>, vector<1x32xf32>,
    return
  }
  func.func @transform_0(%arg0: i32, %arg1: memref<8xi32, #tpu.memory_space<smem>>) -> (i32, i32) {
    %c0_i32 = arith.constant 0 : i32
    %c0_i32_0 = arith.constant 0 : i32
    %c0_i32_1 = arith.constant 0 : i32
    return %c0_i32, %c0_i32_0 : i32, i32
  }
  func.func @transform_1(%arg0: i32, %arg1: memref<8xi32, #tpu.memory_space<smem>>) -> (i32, i32) {
    %c0_i32 = arith.constant 0 : i32
    %c0_i32_0 = arith.constant 0 : i32
    %c0_i32_1 = arith.constant 0 : i32
    return %c0_i32, %c0_i32_0 : i32, i32
  }
  func.func @transform_2(%arg0: i32, %arg1: memref<8xi32, #tpu.memory_space<smem>>) -> (i32, i32) {
    %c0_i32 = arith.constant 0 : i32
    %c0_i32_0 = arith.constant 0 : i32
    %c0_i32_1 = arith.constant 0 : i32
    return %c0_i32, %c0_i32_0 : i32, i32
  }
  func.func @transform_3(%arg0: i32, %arg1: memref<8xi32, #tpu.memory_space<smem>>) -> (i32, i32) {
    %c0_i32 = arith.constant 0 : i32
    %c0_i32_0 = arith.constant 0 : i32
    %c0_i32_1 = arith.constant 0 : i32
    return %c0_i32, %c0_i32_0 : i32, i32
  }
  func.func @transform_4(%arg0: i32, %arg1: memref<8xi32, #tpu.memory_space<smem>>) -> (i32, i32) {
    %c0_i32 = arith.constant 0 : i32
    %c0_i32_0 = arith.constant 0 : i32
    %c0_i32_1 = arith.constant 0 : i32
    return %c0_i32, %c0_i32_0 : i32, i32
  }
}

</mosaic_0001>

<bundles_post_ra>
// kernel: tpu_custom_call.1
= control target key start
LH: loop header
LB: loop body
LE: loop exit
PB: predicated region body
PF: predicated region fallthrough
CT: control target
= control target key end

     0   :  { %s2016_s0 = inlined_call_operand.vmem [shape: s32[8], index: 0, kind: input, shape index: {}]   ;;  %s2017_s1 = inlined_call_operand.vmem [shape: f32[128,192], index: 1, kind: input, shape index: {}]   ;;  %s2018_s2 = inlined_call_operand.vmem [shape: f32[64,192], index: 2, kind: input, shape index: {}]   ;;  %s2019_s3 = inlined_call_operand.vmem [shape: f32[1,64], index: 3, kind: input, shape index: {}]   ;;  %s2020_s4 = inlined_call_operand.hbm [shape: f32[8,32], index: 4, kind: output, shape index: {0}]   ;;  %s2021_s5 = inlined_call_operand.hbm [shape: f32[1,32], index: 5, kind: output, shape index: {1}]  }
   0x1   :  { %s11_s20 = sshll.u32 %s2016_s0, 4  ;;  %s12_s20 = int_to_ptr.vmem [resolvable:$true] %s11_s20 }
   0x2   :  { %s1438_s21 = scalar_lea.vmem %s12_s20, 16  ;;  %p1443_p1 = scmp.lt.s32.totalorder %s12_s20, %s12_s20 }
   0x3   :  { %p1439_p0 = scmp.ne.s32.totalorder %s12_s20, %s1438_s21  ;;  %p1444_p2 = scmp.lt.s32.totalorder %s1438_s21, %s1438_s21 }
   0x5   :  { %p1445_p3 = por %p1444_p2, %p1443_p1 }
   0x7   :  { %p1446_p4 = pnand %p1445_p3, %p1439_p0 }
   0x9   :  { %1449 = shalt.err (!%p1446_p4)  }
   0xa   :  { %s1500_s22 = smov [#allocation3]  }
   0xb   :  { %14 = dma.vmem_to_smem %s12_s20, 16, %s1500_s22, [#allocation2] }
   0xc   :  { %1494 = dma.done.wait [#allocation2], 16 }
   0xd   :  { %1495 = vsyncadd [#allocation2], 4294967280 }
   0xe   :  { %16 = sfence }
   0xf   :  { %17 = vsyncpa [#allocation5], 0  ;;  %v25_v0 = vlaneseq  ;;  %s1539_s23 = sld [smem:[#allocation3 + $0x6]]  ;;  %v144_v1 = vld [vmem:[%s2017_s1 + $0x8] sm:$0xff]  ;;  %v146_v2 = vld [vmem:[%s2017_s1 + $0x18] sm:$0xff]  ;;  %s1547_s27 = sld [smem:[#allocation3 + $0x5]] }
  0x10   :  { %s1549_s28 = sld [smem:[#allocation3 + $0x2]]  ;;  %v1204_v3 = vpack.c.bf16 %v146_v2, %v144_v1  ;;  %v143_v4 = vld [vmem:[%s2017_s1] sm:$0xff]  ;;  %v145_v5 = vld [vmem:[%s2017_s1 + $0x10] sm:$0xff]  ;;  %v1501_v6 = vmov 0.0   ;;  %s1561_s8 = sld [smem:[#allocation3 + $0x3]]  ;;  %v148_v9 = vld [vmem:[%s2017_s1 + $0x28] sm:$0xff] }
  0x11   :  { %330 = vmatprep.mubr.f32.mxu1 %v1501_v6  ;;  %239 = vmatprep.mubr.f32.mxu0 %v1501_v6  ;;  %v1559_v7 = vand.u32 127, %v25_v0  ;;  %s1563_s9 = sld [smem:[#allocation3 + $0x7]]  ;;  %v1206_v8 = vpack.c.bf16 %v145_v5, %v143_v4  ;;  %s1568_s12 = sld [smem:[#allocation3 + $0x4]]  ;;  %v150_v10 = vld [vmem:[%s2017_s1 + $0x38] sm:$0xff]  ;;  %v147_v11 = vld [vmem:[%s2017_s1 + $0x20] sm:$0xff]  ;;  %v149_v13 = vld [vmem:[%s2017_s1 + $0x30] sm:$0xff] }
  0x12   :  { %s1570_s13 = sld [smem:[#allocation3]]  ;;  %1205 = vmatprep.subr.bf16.mxu0 %v1204_v3  ;;  %s1578_s18 = sld [smem:[#allocation3 + $0x1]]  ;;  %v1208_v12 = vpack.c.bf16 %v150_v10, %v148_v9  ;;  %v152_v14 = vld [vmem:[%s2017_s1 + $0x48] sm:$0xff]  ;;  %v154_v15 = vld [vmem:[%s2017_s1 + $0x58] sm:$0xff]  ;;  %v1210_v16 = vpack.c.bf16 %v149_v13, %v147_v11  ;;  %v151_v18 = vld [vmem:[%s2017_s1 + $0x40] sm:$0xff] }
  0x13   :  { %1207 = vmatpush1.bf16.msra.mxu0 %v1206_v8  ;;  %v1212_v17 = vpack.c.bf16 %v154_v15, %v152_v14  ;;  %v153_v19 = vld [vmem:[%s2017_s1 + $0x50] sm:$0xff]  ;;  %v156_v20 = vld [vmem:[%s2017_s1 + $0x68] sm:$0xff]  ;;  %v158_v23 = vld [vmem:[%s2017_s1 + $0x78] sm:$0xff]  ;;  %s1502_s0 = smov 64  }
  0x14   :  { %1209 = vmatprep.subr.bf16.mxu0 %v1208_v12  ;;  %v1214_v22 = vpack.c.bf16 %v153_v19, %v151_v18  ;;  %v1216_v26 = vpack.c.bf16 %v158_v23, %v156_v20  ;;  %v155_v32 = vld [vmem:[%s2017_s1 + $0x60] sm:$0xff]  ;;  %v157_v33 = vld [vmem:[%s2017_s1 + $0x70] sm:$0xff]  ;;  %v247_v37 = vld [vmem:[%s2018_s2 + $0x8] sm:$0xff] }
  0x15   :  { %v49_v21 = vstv %s1539_s23  ;;  %v64_v24 = vstv %s1547_s27  ;;  %v249_v38 = vld [vmem:[%s2018_s2 + $0x18] sm:$0xff]  ;;  %v160_v39 = vld [vmem:[%s2017_s1 + $0x88] sm:$0xff]  ;;  %v1218_v48 = vpack.c.bf16 %v157_v33, %v155_v32 }
  0x16   :  { %vm50_vm0 = vcmp.eq.s32.totalorder %v1559_v7, %v49_v21  ;;  %v59_v25 = vstv %s1549_s28  ;;  %vm65_vm1 = vcmp.eq.s32.totalorder %v1559_v7, %v64_v24  ;;  %v74_v28 = vstv %s1561_s8  ;;  %v162_v43 = vld [vmem:[%s2017_s1 + $0x98] sm:$0xff]  ;;  %v246_v44 = vld [vmem:[%s2018_s2] sm:$0xff] }
  0x17   :  { %v1606_v27 = vsel %vm50_vm0, 1.0, %v1501_v6  ;;  %vm60_vm2 = vcmp.eq.s32.totalorder %v1559_v7, %v59_v25  ;;  %1211 = vmatpush1.bf16.msra.mxu0 %v1210_v16  ;;  %v1612_v29 = vsel %vm65_vm1, 1.0, %v1501_v6  ;;  %vm75_vm3 = vcmp.eq.s32.totalorder %v1559_v7, %v74_v28  ;;  %v248_v45 = vld [vmem:[%s2018_s2 + $0x10] sm:$0xff]  ;;  %v251_v49 = vld [vmem:[%s2018_s2 + $0x28] sm:$0xff]  ;;  %v253_v50 = vld [vmem:[%s2018_s2 + $0x38] sm:$0xff] }
  0x18   :  { %v1615_v30 = vsel %vm60_vm2, 1.0, %v1501_v6  ;;  %v33_v31 = vstv %s1563_s9  ;;  %1213 = vmatprep.subr.bf16.mxu0 %v1212_v17  ;;  %v1370_v34 = vpack.i.bf16 %v1612_v29, %v1606_v27  ;;  %v1628_v35 = vsel %vm75_vm3, 1.0, %v1501_v6  ;;  %v159_v54 = vld [vmem:[%s2017_s1 + $0x80] sm:$0xff]  ;;  %v161_v55 = vld [vmem:[%s2017_s1 + $0x90] sm:$0xff]  ;;  %v164_v59 = vld [vmem:[%s2017_s1 + $0xa8] sm:$0xff] }
  0x19   :  { %vm34_vm4 = vcmp.eq.s32.totalorder %v1559_v7, %v33_v31  ;;  %v79_v36 = vstv %s1568_s12  ;;  %v1380_v40 = vpack.i.bf16 %v1615_v30, %v1628_v35  ;;  %v28_v42 = vstv %s1570_s13  ;;  %v166_v60 = vld [vmem:[%s2017_s1 + $0xb8] sm:$0xff]  ;;  %v250_v63 = vld [vmem:[%s2018_s2 + $0x20] sm:$0xff] }
  0x1a   :  { %v1644_v41 = vsel %vm34_vm4, 1.0, %v1501_v6  ;;  %vm80_vm5 = vcmp.eq.s32.totalorder %v1559_v7, %v79_v36  ;;  %1371 = vrot.lane.b32.xlu0 %v1370_v34, %s1502_s0  ;;  %vm29_vm6 = vcmp.eq.s32.totalorder %v1559_v7, %v28_v42  ;;  %v44_v47 = vstv %s1578_s18  ;;  %v252_v0 = vld [vmem:[%s2018_s2 + $0x30] sm:$0xff]  ;;  %v255_v2 = vld [vmem:[%s2018_s2 + $0x48] sm:$0xff] }
  0x1b   :  { %v1659_v46 = vsel %vm80_vm5, 1.0, %v1501_v6  ;;  %1215 = vmatpush1.bf16.msra.mxu0 %v1214_v22  ;;  %1381 = vrot.lane.b32.xlu1 %v1380_v40, %s1502_s0  ;;  %v1673_v52 = vsel %vm29_vm6, 1.0, %v1501_v6  ;;  %vm45_vm7 = vcmp.eq.s32.totalorder %v1559_v7, %v44_v47  ;;  %v1676_v53 = vpack.c.bf16 %v249_v38, %v247_v37  ;;  %v257_v3 = vld [vmem:[%s2018_s2 + $0x58] sm:$0xff]  ;;  %v163_v5 = vld [vmem:[%s2017_s1 + $0xa0] sm:$0xff]  ;;  %v165_v7 = vld [vmem:[%s2017_s1 + $0xb0] sm:$0xff] }
  0x1c   :  { %v1375_v51 = vpack.i.bf16 %v1659_v46, %v1644_v41  ;;  %1217 = vmatprep.subr.bf16.mxu0 %v1216_v26  ;;  %v1685_v56 = vsel %vm45_vm7, 1.0, %v1501_v6  ;;  %v1220_v57 = vpack.c.bf16 %v162_v43, %v160_v39  ;;  %v1687_v58 = vpack.c.bf16 %v248_v45, %v246_v44  ;;  %v168_v9 = vld [vmem:[%s2017_s1 + $0xc8] sm:$0xff]  ;;  %v170_v10 = vld [vmem:[%s2017_s1 + $0xd8] sm:$0xff] }
  0x1d   :  { %v1385_v61 = vpack.i.bf16 %v1673_v52, %v1685_v56  ;;  %1237 = vmatprep.subr.bf16.mxu1 %v1676_v53  ;;  %v1698_v62 = vpack.c.bf16 %v253_v50, %v251_v49  ;;  %v1222_v1 = vpack.c.bf16 %v161_v55, %v159_v54  ;;  %v1224_v4 = vpack.c.bf16 %v166_v60, %v164_v59 }
  0x1e   :  { %1376 = vrot.lane.b32.xlu0 %v1375_v51, %s1502_s0  ;;  %1239 = vmatpush1.bf16.msra.mxu1 %v1687_v58  ;;  %v1721_v8 = vpack.c.bf16 %v252_v0, %v250_v63 }
  0x1f   :  { %1219 = vmatpush1.bf16.msra.mxu0 %v1218_v48  ;;  %1386 = vrot.lane.b32.xlu1 %v1385_v61, %s1502_s0 }
  0x20   :  { %1221 = vmatprep.subr.bf16.mxu0 %v1220_v57 }
  0x21   :  { %18 = vsyncpa [#allocation7], 0  ;;  %1241 = vmatprep.subr.bf16.mxu1 %v1698_v62  ;;  %v1730_v11 = vpack.c.bf16 %v257_v3, %v255_v2  ;;  %v254_v12 = vld [vmem:[%s2018_s2 + $0x40] sm:$0xff]  ;;  %v256_v13 = vld [vmem:[%s2018_s2 + $0x50] sm:$0xff]  ;;  %v1226_v14 = vpack.c.bf16 %v165_v7, %v163_v5  ;;  %v1228_v17 = vpack.c.bf16 %v170_v10, %v168_v9  ;;  %vm41_vm8 = vcmask 523264   ;;  %s1504_s29 = smov [#allocation4]  }
  0x22   :  { %v259_v15 = vld [vmem:[%s2018_s2 + $0x68] sm:$0xff]  ;;  %v261_v16 = vld [vmem:[%s2018_s2 + $0x78] sm:$0xff]  ;;  %v167_v18 = vld [vmem:[%s2017_s1 + $0xc0] sm:$0xff]  ;;  %1243 = vmatpush1.bf16.msra.mxu1 %v1721_v8  ;;  %v1751_v20 = vpack.c.bf16 %v256_v13, %v254_v12  ;;  %vm129_vm9 = vcmask 1040384   ;;  %vm131_vm10 = vcmask 1041408   ;;  %vm133_vm11 = vcmask 1042432  }
  0x23   :  { %1223 = vmatpush1.bf16.msra.mxu0 %v1222_v1  ;;  %v169_v19 = vld [vmem:[%s2017_s1 + $0xd0] sm:$0xff]  ;;  %v172_v21 = vld [vmem:[%s2017_s1 + $0xe8] sm:$0xff]  ;;  %v174_v22 = vld [vmem:[%s2017_s1 + $0xf8] sm:$0xff]  ;;  %1245 = vmatprep.subr.bf16.mxu1 %v1730_v11  ;;  %v1760_v23 = vpack.c.bf16 %v261_v16, %v259_v15  ;;  %vm135_vm12 = vcmask 1043456   ;;  %vm137_vm13 = vcmask 1044480   ;;  %vm139_vm14 = vcmask 1045504  }
  0x24   :  { %1225 = vmatprep.subr.bf16.mxu0 %v1224_v4  ;;  %v258_v24 = vld [vmem:[%s2018_s2 + $0x60] sm:$0xff]  ;;  %v260_v25 = vld [vmem:[%s2018_s2 + $0x70] sm:$0xff]  ;;  %v1230_v26 = vpack.c.bf16 %v169_v19, %v167_v18  ;;  %v1232_v28 = vpack.c.bf16 %v174_v22, %v172_v21  ;;  %vm141_vm15 = vcmask 1046528   ;;  %s1152_s30 = sshll.u32 %s1504_s29, 4  ;;  %s1505_s18 = smov [#allocation6]   ;;  %vm1134_vm0 = vcmask 261120   ;;  %s1153_s30 = int_to_ptr.vmem [resolvable:$true] %s1152_s30 }
  0x25   :  { %v171_v31 = vld [vmem:[%s2017_s1 + $0xe0] sm:$0xff]  ;;  %v173_v32 = vld [vmem:[%s2017_s1 + $0xf0] sm:$0xff]  ;;  %v1775_v33 = vpack.c.bf16 %v260_v25, %v258_v24  ;;  %s1162_s6 = sshll.u32 %s1505_s18, 4  ;;  %vm1144_vm1 = vcmask 261127   ;;  %s1450_s7 = scalar_lea.vmem %s1153_s30, 128  ;;  %s1984_s6 = int_to_ptr.vmem [resolvable:$true] %s1162_s6 }
  0x26   :  { %1247 = vmatpush1.bf16.msra.mxu1 %v1751_v20  ;;  %v1234_v34 = vpack.c.bf16 %v173_v32, %v171_v31  ;;  %v1831_v16 = vld [vmem:[%s2019_s3] sm:$0x1]  ;;  %s1503_s3 = smov 96   ;;  %p1451_p5 = scmp.ne.s32.totalorder %s1153_s30, %s1450_s7 }
  0x27   :  { %1227 = vmatpush1.bf16.msra.mxu0 %v1226_v14  ;;  %1249 = vmatprep.subr.bf16.mxu1 %v1760_v23  ;;  %p1455_p6 = scmp.lt.s32.totalorder %s1153_s30, %s1153_s30  ;;  %p1456_p7 = scmp.lt.s32.totalorder %s1450_s7, %s1450_s7 }
  0x28   :  { %1229 = vmatprep.subr.bf16.mxu0 %v1228_v17 }
  0x29   :  { %p1457_p8 = por %p1456_p7, %p1455_p6 }
  0x2a   :  { %1251 = vmatpush1.bf16.msra.mxu1 %v1775_v33 }
  0x2b   :  { %1231 = vmatpush1.bf16.msra.mxu0 %v1230_v26  ;;  %1253 = vmatprep.subr.bf16.mxu1 %v1676_v53  ;;  %p1458_p9 = pnand %p1457_p8, %p1451_p5 }
  0x2c   :  { %1233 = vmatprep.subr.bf16.mxu0 %v1232_v28 }
  0x2d   :  { %331 = vmatmul.mubr.f32.vlgmr.msra.gmra.mrb[0].mxu1 %v1501_v6 }
  0x2e   :  { %1255 = vmatpush1.bf16.msra.mxu1 %v1687_v58  ;;  %425 = vmatprep.mubr.f32.mxu1 %v1501_v6 }
  0x2f   :  { %1235 = vmatpush1.bf16.msra.mxu0 %v1234_v34  ;;  %1257 = vmatprep.subr.bf16.mxu1 %v1698_v62 }
  0x30   :  { %1269 = vmatprep.subr.bf16.mxu0 %v1676_v53 }
  0x32   :  { %1259 = vmatpush1.bf16.msra.mxu1 %v1721_v8 }
  0x33   :  { %1261 = vmatprep.subr.bf16.mxu1 %v1730_v11 }
  0x36   :  { %1263 = vmatpush1.bf16.msra.mxu1 %v1751_v20 }
  0x37   :  { %1265 = vmatprep.subr.bf16.mxu1 %v1760_v23 }
  0x3a   :  { %1267 = vmatpush1.bf16.msra.mxu1 %v1775_v33 }
  0x3b   :  { %1285 = vmatprep.subr.bf16.mxu1 %v1676_v53 }
  0x8c   :  { %v1372_v36 = vpop.permute.xlu0 %1371 }
  0x8d   :  { %v1374_v37 = vunpack.i.h.bf16 %v1372_v36  ;;  %v1373_v38 = vunpack.i.l.bf16 %v1372_v36  ;;  %v1382_v39 = vpop.permute.xlu1 %1381 }
  0x8e   :  { %v1383_v40 = vunpack.i.l.bf16 %v1382_v39  ;;  %v1384_v43 = vunpack.i.h.bf16 %v1382_v39 }
  0x8f   :  { %v57_v42 = vsel %vm41_vm8, %v1685_v56, %v1373_v38  ;;  %v72_v44 = vsel %vm41_vm8, %v1615_v30, %v1374_v37 }
  0x90   :  { %v1377_v45 = vpop.permute.xlu0 %1376  ;;  %v109_v50 = vrot.slane %v57_v42, 7  ;;  %v92_v51 = vsel %vm41_vm8, %v1659_v46, %v1383_v40  ;;  %v112_v57 = vrot.slane %v72_v44, 6  ;;  %v97_v56 = vsel %vm41_vm8, %v1612_v29, %v1384_v43 }
  0x91   :  { %v1379_v47 = vunpack.i.h.bf16 %v1377_v45  ;;  %v1378_v48 = vunpack.i.l.bf16 %v1377_v45  ;;  %v1387_v49 = vpop.permute.xlu1 %1386  ;;  %v118_v0 = vrot.slane %v92_v51, 4  ;;  %v121_v29 = vrot.slane %v97_v56, 3 }
  0x92   :  { %v1389_v54 = vunpack.i.h.bf16 %v1387_v49  ;;  %v1388_v55 = vunpack.i.l.bf16 %v1387_v49 }
  0x93   :  { %v87_v30 = vsel %vm41_vm8, %v1628_v35, %v1379_v47  ;;  %v42_v59 = vsel %vm41_vm8, %v1673_v52, %v1378_v48 }
  0x94   :  { %v115_v60 = vrot.slane %v87_v30, 5  ;;  %v130_v61 = vsel %vm129_vm9, %v42_v59, %v109_v50  ;;  %v107_v63 = vsel %vm41_vm8, %v1644_v41, %v1389_v54  ;;  %v102_v46 = vsel %vm41_vm8, %v1606_v27, %v1388_v55 }
  0x95   :  { %v132_v1 = vsel %vm131_vm10, %v130_v61, %v112_v57  ;;  %v124_v2 = vrot.slane %v102_v46, 2  ;;  %v127_v3 = vrot.slane %v107_v63, 1 }
  0x96   :  { %v134_v35 = vsel %vm133_vm11, %v132_v1, %v115_v60 }
  0x97   :  { %v136_v52 = vsel %vm135_vm12, %v134_v35, %v118_v0 }
  0x98   :  { %v138_v4 = vsel %vm137_vm13, %v136_v52, %v121_v29 }
  0x99   :  { %v140_v41 = vsel %vm139_vm14, %v138_v4, %v124_v2 }
  0x9a   :  { %v142_v5 = vsel %vm141_vm15, %v140_v41, %v127_v3 }
  0x9b   :  { %240 = vmatmul.mubr.f32.vlgmr.msra.gmra.mrb[0].mxu0 %v142_v5 }
  0x9c   :  { %1271 = vmatpush1.bf16.msra.mxu0 %v1687_v58  ;;  %529 = vmatprep.mubr.f32.mxu0 %v1501_v6 }
  0x9d   :  { %1273 = vmatprep.subr.bf16.mxu0 %v1698_v62 }
  0xa0   :  { %1275 = vmatpush1.bf16.msra.mxu0 %v1721_v8 }
  0xa1   :  { %1277 = vmatprep.subr.bf16.mxu0 %v1730_v11 }
  0xa4   :  { %1279 = vmatpush1.bf16.msra.mxu0 %v1751_v20 }
  0xa5   :  { %1281 = vmatprep.subr.bf16.mxu0 %v1760_v23 }
  0xa8   :  { %1283 = vmatpush1.bf16.msra.mxu0 %v1775_v33 }
  0xa9   :  { %1301 = vmatprep.subr.bf16.mxu0 %v1676_v53 }
 0x100   :  { %v332_v27 = vpop.f32.mrb[0].mxu1 }
 0x101   :  { %v334_v7 = vpop.f32.mrb[1].mxu1 }
 0x102   :  { %v344_v17 = vadd.f32 %v334_v7, %v1831_v16 }
 0x16e   :  { %v1823_v9 = vpop.f32.mrb[0].mxu0 }
 0x16f   :  { %v337_v10 = vadd.f32 %v332_v27, %v1823_v9  ;;  %v1826_v12 = vpop.f32.mrb[1].mxu0 }
 0x171   :  { %v1189_v13 = vmul.f32 -1.442695, %v337_v10 }
 0x173   :  { %1390 = vpow2.f32 %v1189_v13 }
 0x17d   :  { %v1391_v14 = vpop.eup %1390 }
 0x17e   :  { %v341_v15 = vadd.f32 1.0, %v1391_v14 }
 0x180   :  { %1392 = vrcp.f32 %v341_v15 }
 0x18a   :  { %v1393_v18 = vpop.eup %1392 }
 0x18b   :  { %v345_v19 = vmul.f32 %v1393_v18, %v344_v17  ;;  %v348_v24 = vsub.f32 1.0, %v1393_v18  ;;  %v354_v26 = vmul.f32 0.0, %v1393_v18 }
 0x18d   :  { %v346_v21 = vadd.f32 %v345_v19, %v1826_v12 }
 0x18f   :  { %1394 = vtanh.f32 %v346_v21 }
 0x199   :  { %v1395_v22 = vpop.eup %1394 }
 0x19a   :  { %350 = vrot.lane.b32.xlu0 %v1395_v22, %s1502_s0 }
 0x20c   :  { %v351_v25 = vpop.permute.xlu0 %350 }
 0x20d   :  { %v353_v28 = vmul.f32 %v351_v25, %v348_v24 }
 0x20f   :  { %v1836_v31 = vadd.f32 %v354_v26, %v353_v28 }
 0x211   :  { %357 = vrot.lane.b32.xlu1 %v1836_v31, %s1502_s0  ;;  %v455_v51 = vrot.slane %v1836_v31, 7 }
 0x283   :  { %v358_v32 = vpop.permute.xlu1 %357 }
 0x284   :  { %1190 = vmatmul.mubr.msk.f32.vlgmr.msra.gmra.mrb[2].mxu1 %vm41_vm8, %v358_v32 }
 0x285   :  { %1287 = vmatpush1.bf16.msra.mxu1 %v1687_v58  ;;  %633 = vmatprep.mubr.f32.mxu1 %v1501_v6 }
 0x286   :  { %1289 = vmatprep.subr.bf16.mxu1 %v1698_v62 }
 0x289   :  { %1291 = vmatpush1.bf16.msra.mxu1 %v1721_v8 }
 0x28a   :  { %1293 = vmatprep.subr.bf16.mxu1 %v1730_v11 }
 0x28d   :  { %1295 = vmatpush1.bf16.msra.mxu1 %v1751_v20 }
 0x28e   :  { %1297 = vmatprep.subr.bf16.mxu1 %v1760_v23 }
 0x291   :  { %1299 = vmatpush1.bf16.msra.mxu1 %v1775_v33 }
 0x292   :  { %1317 = vmatprep.subr.bf16.mxu1 %v1676_v53 }
 0x357   :  { %v427_v34 = vpop.f32.mrb[2].mxu1 }
 0x358   :  { %v433_v36 = vrot.slane %v427_v34, 7  ;;  %v429_v37 = vpop.f32.mrb[3].mxu1 }
 0x359   :  { %v442_v43 = vadd.f32 %v429_v37, %v1831_v16 }
 0x35a   :  { %v435_v38 = vadd.f32 %v433_v36, %v1823_v9 }
 0x35b   :  { %v444_v44 = vrot.slane %v442_v43, 7 }
 0x35c   :  { %v1191_v39 = vmul.f32 -1.442695, %v435_v38 }
 0x35e   :  { %1396 = vpow2.f32 %v1191_v39 }
 0x368   :  { %v1397_v40 = vpop.eup %1396 }
 0x369   :  { %v439_v42 = vadd.f32 1.0, %v1397_v40 }
 0x36b   :  { %1398 = vrcp.f32 %v439_v42 }
 0x375   :  { %v1399_v45 = vpop.eup %1398 }
 0x376   :  { %v446_v47 = vmul.f32 %v1399_v45, %v444_v44  ;;  %v449_v50 = vsub.f32 1.0, %v1399_v45  ;;  %v457_v57 = vmul.f32 %v1399_v45, %v455_v51 }
 0x378   :  { %v447_v48 = vadd.f32 %v446_v47, %v1826_v12 }
 0x37a   :  { %1400 = vtanh.f32 %v447_v48 }
 0x384   :  { %v1401_v49 = vpop.eup %1400 }
 0x385   :  { %451 = vrot.lane.b32.xlu0 %v1401_v49, %s1502_s0 }
 0x3f7   :  { %v452_v54 = vpop.permute.xlu0 %451 }
 0x3f8   :  { %v454_v55 = vmul.f32 %v452_v54, %v449_v50 }
 0x3fa   :  { %v1855_v56 = vadd.f32 %v457_v57, %v454_v55 }
 0x3fc   :  { %v460_v30 = vrot.slane %v1855_v56, 1  ;;  %v559_v27 = vrot.slane %v1855_v56, 7 }
 0x3fe   :  { %461 = vrot.lane.b32.xlu1 %v460_v30, %s1502_s0 }
 0x470   :  { %v462_v59 = vpop.permute.xlu1 %461 }
 0x471   :  { %1192 = vmatmul.mubr.msk.f32.vlgmr.msra.gmra.mrb[2].mxu0 %vm41_vm8, %v462_v59 }
 0x472   :  { %1303 = vmatpush1.bf16.msra.mxu0 %v1687_v58  ;;  %737 = vmatprep.mubr.f32.mxu0 %v1501_v6 }
 0x473   :  { %1305 = vmatprep.subr.bf16.mxu0 %v1698_v62 }
 0x476   :  { %1307 = vmatpush1.bf16.msra.mxu0 %v1721_v8 }
 0x477   :  { %1309 = vmatprep.subr.bf16.mxu0 %v1730_v11 }
 0x47a   :  { %1311 = vmatpush1.bf16.msra.mxu0 %v1751_v20 }
 0x47b   :  { %1313 = vmatprep.subr.bf16.mxu0 %v1760_v23 }
 0x47e   :  { %1315 = vmatpush1.bf16.msra.mxu0 %v1775_v33 }
 0x47f   :  { %1333 = vmatprep.subr.bf16.mxu0 %v1676_v53 }
 0x544   :  { %v531_v60 = vpop.f32.mrb[2].mxu0 }
 0x545   :  { %v537_v61 = vrot.slane %v531_v60, 6  ;;  %v533_v63 = vpop.f32.mrb[3].mxu0 }
 0x546   :  { %v546_v29 = vadd.f32 %v533_v63, %v1831_v16 }
 0x547   :  { %v539_v46 = vadd.f32 %v537_v61, %v1823_v9 }
 0x548   :  { %v548_v3 = vrot.slane %v546_v29, 6 }
 0x549   :  { %v1193_v0 = vmul.f32 -1.442695, %v539_v46 }
 0x54b   :  { %1402 = vpow2.f32 %v1193_v0 }
 0x555   :  { %v1403_v1 = vpop.eup %1402 }
 0x556   :  { %v543_v2 = vadd.f32 1.0, %v1403_v1 }
 0x558   :  { %1404 = vrcp.f32 %v543_v2 }
 0x562   :  { %v1405_v35 = vpop.eup %1404 }
 0x563   :  { %v550_v52 = vmul.f32 %v1405_v35, %v548_v3  ;;  %v553_v5 = vsub.f32 1.0, %v1405_v35  ;;  %v561_v10 = vmul.f32 %v1405_v35, %v559_v27 }
 0x565   :  { %v551_v4 = vadd.f32 %v550_v52, %v1826_v12 }
 0x567   :  { %1406 = vtanh.f32 %v551_v4 }
 0x571   :  { %v1407_v41 = vpop.eup %1406 }
 0x572   :  { %555 = vrot.lane.b32.xlu0 %v1407_v41, %s1502_s0 }
 0x5e4   :  { %v556_v7 = vpop.permute.xlu0 %555 }
 0x5e5   :  { %v558_v13 = vmul.f32 %v556_v7, %v553_v5 }
 0x5e7   :  { %v1874_v14 = vadd.f32 %v561_v10, %v558_v13 }
 0x5e9   :  { %v564_v15 = vrot.slane %v1874_v14, 2  ;;  %v663_v39 = vrot.slane %v1874_v14, 7 }
 0x5eb   :  { %565 = vrot.lane.b32.xlu1 %v564_v15, %s1502_s0 }
 0x65d   :  { %v566_v17 = vpop.permute.xlu1 %565 }
 0x65e   :  { %1194 = vmatmul.mubr.msk.f32.vlgmr.msra.gmra.mrb[4].mxu1 %vm41_vm8, %v566_v17 }
 0x65f   :  { %1319 = vmatpush1.bf16.msra.mxu1 %v1687_v58  ;;  %841 = vmatprep.mubr.f32.mxu1 %v1501_v6 }
 0x660   :  { %1321 = vmatprep.subr.bf16.mxu1 %v1698_v62 }
 0x663   :  { %1323 = vmatpush1.bf16.msra.mxu1 %v1721_v8 }
 0x664   :  { %1325 = vmatprep.subr.bf16.mxu1 %v1730_v11 }
 0x667   :  { %1327 = vmatpush1.bf16.msra.mxu1 %v1751_v20 }
 0x668   :  { %1329 = vmatprep.subr.bf16.mxu1 %v1760_v23 }
 0x66b   :  { %1331 = vmatpush1.bf16.msra.mxu1 %v1775_v33 }
 0x66c   :  { %1349 = vmatprep.subr.bf16.mxu1 %v1676_v53 }
 0x731   :  { %v635_v18 = vpop.f32.mrb[4].mxu1 }
 0x732   :  { %v641_v19 = vrot.slane %v635_v18, 5  ;;  %v637_v21 = vpop.f32.mrb[5].mxu1 }
 0x733   :  { %v650_v28 = vadd.f32 %v637_v21, %v1831_v16 }
 0x734   :  { %v643_v22 = vadd.f32 %v641_v19, %v1823_v9 }
 0x735   :  { %v652_v32 = vrot.slane %v650_v28, 5 }
 0x736   :  { %v1195_v24 = vmul.f32 -1.442695, %v643_v22 }
 0x738   :  { %1408 = vpow2.f32 %v1195_v24 }
 0x742   :  { %v1409_v25 = vpop.eup %1408 }
 0x743   :  { %v647_v26 = vadd.f32 1.0, %v1409_v25 }
 0x745   :  { %1410 = vrcp.f32 %v647_v26 }
 0x74f   :  { %v1411_v34 = vpop.eup %1410 }
 0x750   :  { %v654_v36 = vmul.f32 %v1411_v34, %v652_v32  ;;  %v657_v53 = vsub.f32 1.0, %v1411_v34  ;;  %v665_v42 = vmul.f32 %v1411_v34, %v663_v39 }
 0x752   :  { %v655_v37 = vadd.f32 %v654_v36, %v1826_v12 }
 0x754   :  { %1412 = vtanh.f32 %v655_v37 }
 0x75e   :  { %v1413_v38 = vpop.eup %1412 }
 0x75f   :  { %659 = vrot.lane.b32.xlu0 %v1413_v38, %s1502_s0 }
 0x7d1   :  { %v660_v40 = vpop.permute.xlu0 %659 }
 0x7d2   :  { %v662_v43 = vmul.f32 %v660_v40, %v657_v53 }
 0x7d4   :  { %v1893_v44 = vadd.f32 %v665_v42, %v662_v43 }
 0x7d6   :  { %v668_v45 = vrot.slane %v1893_v44, 3  ;;  %v767_v1 = vrot.slane %v1893_v44, 7 }
 0x7d8   :  { %669 = vrot.lane.b32.xlu1 %v668_v45, %s1502_s0 }
 0x84a   :  { %v670_v47 = vpop.permute.xlu1 %669 }
 0x84b   :  { %1196 = vmatmul.mubr.msk.f32.vlgmr.msra.gmra.mrb[4].mxu0 %vm41_vm8, %v670_v47 }
 0x84c   :  { %1335 = vmatpush1.bf16.msra.mxu0 %v1687_v58  ;;  %945 = vmatprep.mubr.f32.mxu0 %v1501_v6 }
 0x84d   :  { %1337 = vmatprep.subr.bf16.mxu0 %v1698_v62 }
 0x850   :  { %1339 = vmatpush1.bf16.msra.mxu0 %v1721_v8 }
 0x851   :  { %1341 = vmatprep.subr.bf16.mxu0 %v1730_v11 }
 0x854   :  { %1343 = vmatpush1.bf16.msra.mxu0 %v1751_v20 }
 0x855   :  { %1345 = vmatprep.subr.bf16.mxu0 %v1760_v23 }
 0x858   :  { %1347 = vmatpush1.bf16.msra.mxu0 %v1775_v33 }
 0x91e   :  { %v739_v48 = vpop.f32.mrb[4].mxu0 }
 0x91f   :  { %v745_v49 = vrot.slane %v739_v48, 4  ;;  %v741_v50 = vpop.f32.mrb[5].mxu0 }
 0x920   :  { %v754_v30 = vadd.f32 %v741_v50, %v1831_v16 }
 0x921   :  { %v747_v51 = vadd.f32 %v745_v49, %v1823_v9 }
 0x922   :  { %v756_v59 = vrot.slane %v754_v30, 4 }
 0x923   :  { %v1197_v54 = vmul.f32 -1.442695, %v747_v51 }
 0x925   :  { %1414 = vpow2.f32 %v1197_v54 }
 0x92f   :  { %v1415_v55 = vpop.eup %1414 }
 0x930   :  { %v751_v57 = vadd.f32 1.0, %v1415_v55 }
 0x932   :  { %1416 = vrcp.f32 %v751_v57 }
 0x93c   :  { %v1417_v60 = vpop.eup %1416 }
 0x93d   :  { %v758_v61 = vmul.f32 %v1417_v60, %v756_v59  ;;  %v761_v0 = vsub.f32 1.0, %v1417_v60  ;;  %v769_v29 = vmul.f32 %v1417_v60, %v767_v1 }
 0x93f   :  { %v759_v63 = vadd.f32 %v758_v61, %v1826_v12 }
 0x941   :  { %1418 = vtanh.f32 %v759_v63 }
 0x94b   :  { %v1419_v46 = vpop.eup %1418 }
 0x94c   :  { %763 = vrot.lane.b32.xlu0 %v1419_v46, %s1502_s0 }
 0x9be   :  { %v764_v2 = vpop.permute.xlu0 %763 }
 0x9bf   :  { %v766_v3 = vmul.f32 %v764_v2, %v761_v0 }
 0x9c1   :  { %v1913_v35 = vadd.f32 %v769_v29, %v766_v3 }
 0x9c3   :  { %v772_v52 = vrot.slane %v1913_v35, 4  ;;  %v871_v15 = vrot.slane %v1913_v35, 7 }
 0x9c5   :  { %773 = vrot.lane.b32.xlu1 %v772_v52, %s1502_s0 }
 0xa37   :  { %v774_v4 = vpop.permute.xlu1 %773 }
 0xa38   :  { %1198 = vmatmul.mubr.msk.f32.vlgmr.msra.gmra.mrb[6].mxu1 %vm41_vm8, %v774_v4 }
 0xa39   :  { %1351 = vmatpush1.bf16.msra.mxu1 %v1687_v58  ;;  %1049 = vmatprep.mubr.f32.mxu1 %v1501_v6 }
 0xa3a   :  { %1353 = vmatprep.subr.bf16.mxu1 %v1698_v62 }
 0xa3d   :  { %1355 = vmatpush1.bf16.msra.mxu1 %v1721_v8 }
 0xa3e   :  { %1357 = vmatprep.subr.bf16.mxu1 %v1730_v11 }
 0xa41   :  { %1359 = vmatpush1.bf16.msra.mxu1 %v1751_v20 }
 0xa42   :  { %1361 = vmatprep.subr.bf16.mxu1 %v1760_v23 }
 0xa45   :  { %1363 = vmatpush1.bf16.msra.mxu1 %v1775_v33 }
 0xb0b   :  { %v843_v41 = vpop.f32.mrb[6].mxu1 }
 0xb0c   :  { %v849_v5 = vrot.slane %v843_v41, 3  ;;  %v845_v27 = vpop.f32.mrb[7].mxu1 }
 0xb0d   :  { %v858_v62 = vadd.f32 %v845_v27, %v1831_v16 }
 0xb0e   :  { %v851_v7 = vadd.f32 %v849_v5, %v1823_v9  ;;  %v1108_v5 = vrot.slane %v1874_v14, 5 }
 0xb0f   :  { %v860_v8 = vrot.slane %v858_v62, 3 }
 0xb10   :  { %v1199_v58 = vmul.f32 -1.442695, %v851_v7 }
 0xb12   :  { %1420 = vpow2.f32 %v1199_v58 }
 0xb1c   :  { %v1421_v6 = vpop.eup %1420 }
 0xb1d   :  { %v855_v10 = vadd.f32 1.0, %v1421_v6 }
 0xb1f   :  { %1422 = vrcp.f32 %v855_v10 }
 0xb29   :  { %v1423_v11 = vpop.eup %1422 }
 0xb2a   :  { %v862_v13 = vmul.f32 %v1423_v11, %v860_v8  ;;  %v865_v33 = vsub.f32 1.0, %v1423_v11  ;;  %v873_v18 = vmul.f32 %v1423_v11, %v871_v15  ;;  %v1113_v8 = vrot.slane %v1855_v56, 3 }
 0xb2c   :  { %v863_v20 = vadd.f32 %v862_v13, %v1826_v12 }
 0xb2e   :  { %1424 = vtanh.f32 %v863_v20 }
 0xb38   :  { %v1425_v23 = vpop.eup %1424 }
 0xb39   :  { %867 = vrot.lane.b32.xlu0 %v1425_v23, %s1502_s0 }
 0xbab   :  { %v868_v17 = vpop.permute.xlu0 %867 }
 0xbac   :  { %v870_v19 = vmul.f32 %v868_v17, %v865_v33 }
 0xbae   :  { %v1931_v21 = vadd.f32 %v873_v18, %v870_v19 }
 0xbb0   :  { %v876_v22 = vrot.slane %v1931_v21, 5  ;;  %v975_v47 = vrot.slane %v1931_v21, 7  ;;  %v1094_v55 = vrot.slane %v1931_v21, 3 }
 0xbb2   :  { %877 = vrot.lane.b32.xlu1 %v876_v22, %s1502_s0 }
 0xc24   :  { %v878_v24 = vpop.permute.xlu1 %877 }
 0xc25   :  { %1200 = vmatmul.mubr.msk.f32.vlgmr.msra.gmra.mrb[6].mxu0 %vm41_vm8, %v878_v24 }
 0xcf8   :  { %v947_v25 = vpop.f32.mrb[6].mxu0 }
 0xcf9   :  { %v953_v26 = vrot.slane %v947_v25, 2  ;;  %v949_v28 = vpop.f32.mrb[7].mxu0 }
 0xcfa   :  { %v962_v38 = vadd.f32 %v949_v28, %v1831_v16 }
 0xcfb   :  { %v955_v32 = vadd.f32 %v953_v26, %v1823_v9 }
 0xcfc   :  { %v964_v53 = vrot.slane %v962_v38, 2 }
 0xcfd   :  { %v1201_v34 = vmul.f32 -1.442695, %v955_v32 }
 0xcff   :  { %1426 = vpow2.f32 %v1201_v34 }
 0xd09   :  { %v1427_v36 = vpop.eup %1426 }
 0xd0a   :  { %v959_v37 = vadd.f32 1.0, %v1427_v36 }
 0xd0c   :  { %1428 = vrcp.f32 %v959_v37 }
 0xd16   :  { %v1429_v39 = vpop.eup %1428 }
 0xd17   :  { %v966_v40 = vmul.f32 %v1429_v39, %v964_v53  ;;  %v969_v45 = vsub.f32 1.0, %v1429_v39  ;;  %v977_v49 = vmul.f32 %v1429_v39, %v975_v47 }
 0xd19   :  { %v967_v42 = vadd.f32 %v966_v40, %v1826_v12 }
 0xd1b   :  { %1430 = vtanh.f32 %v967_v42 }
 0xd25   :  { %v1431_v43 = vpop.eup %1430 }
 0xd26   :  { %971 = vrot.lane.b32.xlu0 %v1431_v43, %s1502_s0 }
 0xd98   :  { %v972_v48 = vpop.permute.xlu0 %971 }
 0xd99   :  { %v974_v50 = vmul.f32 %v972_v48, %v969_v45 }
 0xd9b   :  { %v1941_v51 = vadd.f32 %v977_v49, %v974_v50 }
 0xd9d   :  { %v980_v54 = vrot.slane %v1941_v51, 6  ;;  %v1089_v41 = vrot.slane %v1941_v51, 5  ;;  %v1079_v27 = vrot.slane %v1941_v51, 7 }
 0xd9f   :  { %981 = vrot.lane.b32.xlu1 %v980_v54, %s1502_s0 }
 0xda3   :  { %1095 = vrot.lane.b32.xlu1 %v1094_v55, %s1503_s3 }
 0xda7   :  { %1104 = vrot.lane.b32.xlu1 %v767_v1, %s1503_s3 }
 0xe11   :  { %v982_v57 = vpop.permute.xlu1 %981 }
 0xe12   :  { %1202 = vmatmul.mubr.msk.f32.vlgmr.msra.gmra.mrb[8].mxu1 %vm41_vm8, %v982_v57 }
 0xe15   :  { %v1096_v13 = vpop.permute.xlu1 %1095 }
 0xe16   :  { %v1098_v19 = vadd.f32 %v1096_v13, %v1874_v14 }
 0xe19   :  { %v1105_v23 = vpop.permute.xlu1 %1104 }
 0xe1a   :  { %v1107_v25 = vadd.f32 %v1105_v23, %v1913_v35 }
 0xee5   :  { %v1051_v30 = vpop.f32.mrb[8].mxu1 }
 0xee6   :  { %v1057_v59 = vrot.slane %v1051_v30, 1  ;;  %v1053_v60 = vpop.f32.mrb[9].mxu1 }
 0xee7   :  { %v1066_v2 = vadd.f32 %v1053_v60, %v1831_v16  ;;  %v1118_v16 = vrot.slane %v1836_v31, 1 }
 0xee8   :  { %v1059_v61 = vadd.f32 %v1057_v59, %v1823_v9  ;;  %v1099_v9 = vrot.slane %v1913_v35, 1 }
 0xee9   :  { %v1068_v29 = vrot.slane %v1066_v2, 1 }
 0xeea   :  { %v1203_v63 = vmul.f32 -1.442695, %v1059_v61 }
 0xeec   :  { %1432 = vpow2.f32 %v1203_v63 }
 0xef6   :  { %v1433_v46 = vpop.eup %1432 }
 0xef7   :  { %v1063_v0 = vadd.f32 1.0, %v1433_v46 }
 0xef9   :  { %1434 = vrcp.f32 %v1063_v0 }
 0xf03   :  { %v1435_v3 = vpop.eup %1434 }
 0xf04   :  { %v1070_v52 = vmul.f32 %v1435_v3, %v1068_v29  ;;  %v1081_v58 = vmul.f32 %v1435_v3, %v1079_v27 }
 0xf06   :  { %v1071_v1 = vadd.f32 %v1070_v52, %v1826_v12  ;;  %v1073_v12 = vsub.f32 1.0, %v1435_v3 }
 0xf08   :  { %1436 = vtanh.f32 %v1071_v1 }
 0xf12   :  { %v1437_v4 = vpop.eup %1436 }
 0xf13   :  { %1075 = vrot.lane.b32.xlu0 %v1437_v4, %s1502_s0 }
 0xf17   :  { %1090 = vrot.lane.b32.xlu0 %v1089_v41, %s1503_s3 }
 0xf1b   :  { %1100 = vrot.lane.b32.xlu0 %v1099_v9, %s1503_s3 }
 0xf1f   :  { %1109 = vrot.lane.b32.xlu0 %v1108_v5, %s1503_s3 }
 0xf23   :  { %1119 = vrot.lane.b32.xlu0 %v1118_v16, %s1503_s3 }
 0xf85   :  { %v1076_v7 = vpop.permute.xlu0 %1075 }
 0xf86   :  { %v1078_v6 = vmul.f32 %v1076_v7, %v1073_v12 }
 0xf88   :  { %v1082_v10 = vadd.f32 %v1081_v58, %v1078_v6 }
 0xf89   :  { %v1091_v11 = vpop.permute.xlu0 %1090 }
 0xf8a   :  { %v1084_v62 = vrot.slane %v1082_v10, 7  ;;  %v1093_v17 = vadd.f32 %v1091_v11, %v1855_v56 }
 0xf8c   :  { %1085 = vrot.lane.b32.xlu1 %v1084_v62, %s1503_s3 }
 0xf8d   :  { %v1101_v20 = vpop.permute.xlu0 %1100 }
 0xf8e   :  { %v1103_v22 = vadd.f32 %v1101_v20, %v1893_v44 }
 0xf90   :  { %1114 = vrot.lane.b32.xlu1 %v1113_v8, %s1503_s3 }
 0xf91   :  { %v1110_v33 = vpop.permute.xlu0 %1109 }
 0xf92   :  { %v1112_v34 = vadd.f32 %v1110_v33, %v1931_v21 }
 0xf94   :  { %1136 = vrot.lane.b32.xlu1 %v1082_v10, %s1503_s3 }
 0xf95   :  { %v1120_v26 = vpop.permute.xlu0 %1119 }
 0xf96   :  { %v1122_v37 = vadd.f32 %v1120_v26, %v1082_v10 }
 0xffe   :  { %v1086_v15 = vpop.permute.xlu1 %1085 }
 0xfff   :  { %v1088_v18 = vadd.f32 %v1086_v15, %v1836_v31 }
0x1001   :  { %v1123_v24 = vsel %vm129_vm9, %v1088_v18, %v1093_v17 }
0x1002   :  { %v1124_v28 = vsel %vm131_vm10, %v1123_v24, %v1098_v19  ;;  %v1115_v32 = vpop.permute.xlu1 %1114 }
0x1003   :  { %v1125_v36 = vsel %vm133_vm11, %v1124_v28, %v1103_v22  ;;  %v1117_v56 = vadd.f32 %v1115_v32, %v1941_v51 }
0x1004   :  { %v1126_v31 = vsel %vm135_vm12, %v1125_v36, %v1107_v25 }
0x1005   :  { %v1127_v14 = vsel %vm137_vm13, %v1126_v31, %v1112_v34 }
0x1006   :  { %v1137_v44 = vpop.permute.xlu1 %1136  ;;  %v1128_v38 = vsel %vm139_vm14, %v1127_v14, %v1117_v56 }
0x1007   :  { %v1139_v53 = vadd.f32 %v1137_v44, %v1082_v10  ;;  %v1129_v35 = vsel %vm141_vm15, %v1128_v38, %v1122_v37 }
0x1008   :  { %1131 = vrot.lane.b32.xlu0 %v1129_v35, %s1502_s0 }
0x1009   :  { %1141 = vrot.lane.b32.xlu1 %v1139_v53, %s1502_s0 }
0x107a   :  { %v1132_v21 = vpop.permute.xlu0 %1131 }
0x107b   :  { %v1142_v39 = vpop.permute.xlu1 %1141  ;;  %1135 = vst.msk [vmem:[#allocation4] sm:$0xff] %vm1134_vm0, %v1132_v21 }
0x107c   :  { %1145 = vst.msk [vmem:[#allocation6 - $0x7] sm:$0x80] %vm1144_vm1, %v1142_v39 }
0x107d   :  { %1461 = shalt.err (!%p1458_p9)
}
0x107e   :  { %s1462_s11 = scalar_lea.hbm %s2020_s4, 128 }
0x107f   :  { %p1463_p10 = scmp.ne.s32.totalorder %s2020_s4, %s1462_s11  ;;  %p1466_p11 = scmp.lt.u32.totalorder %s1462_s11, %s2020_s4 }
0x1081   :  { %p1468_p12 = pnand %p1466_p11, %p1463_p10 }
0x1083   :  { %1471 = shalt.err (!%p1468_p12)
}
0x1084   :  { %1155 = dma.vmem_to_hbm [thread:$0]  %s1153_s30, 128, %s2020_s4, [#allocation5]  }
0x1085   :  { %s1472_s15 = scalar_lea.vmem %s1984_s6, 16  ;;  %s1476_s16 = scalar_lea.vmem %s1984_s6, 32 }
0x1086   :  { %p1473_p13 = scmp.ne.s32.totalorder %s1984_s6, %s1472_s15  ;;  %p1477_p0 = scmp.lt.s32.totalorder %s1984_s6, %s1984_s6 }
0x1087   :  { %p1478_p1 = scmp.lt.s32.totalorder %s1476_s16, %s1472_s15 }
0x1089   :  { %p1479_p2 = por %p1478_p1, %p1477_p0 }
0x108b   :  { %p1480_p3 = pnand %p1479_p2, %p1473_p13 }
0x108d   :  { %1483 = shalt.err (!%p1480_p3)
}
0x108e   :  { %s1484_s12 = scalar_lea.hbm %s2021_s5, 16 }
0x108f   :  { %p1485_p4 = scmp.ne.s32.totalorder %s2021_s5, %s1484_s12  ;;  %p1488_p5 = scmp.lt.u32.totalorder %s1484_s12, %s2021_s5 }
0x1091   :  { %p1490_p6 = pnand %p1488_p5, %p1485_p4 }
0x1093   :  { %1493 = shalt.err (!%p1490_p6)
}
0x1094   :  { %1165 = dma.vmem_to_hbm [thread:$0]  %s1984_s6, 16, %s2021_s5, [#allocation7]  }
0x1095   :  { %1496 = dma.done.wait [#allocation5], 128  }
0x1096   :  { %1497 = vsyncadd [#allocation5], 4294967168 }
0x1097   :  { %1498 = dma.done.wait [#allocation7], 16  }
0x1098   :  { %1499 = vsyncadd [#allocation7], 4294967280 }
0x1099   :  { %1172 = vsyncpa [#allocation5], 1 }
0x109a   :  { %1173 = vsyncpa [#allocation7], 1 }

</bundles_post_ra>
